<compile_context>
chip_gen: v6e
topology: v6e:2x2x1
jax: 0.10.0
libtpu: 0.0.40
codegen_flags: <defaults>
</compile_context>

<pallas_src>
import functools
import math

import jax
import jax.numpy as jnp
from jax.experimental import pallas as pl
from jax.experimental.pallas import tpu as pltpu  # noqa: F401  (TPU backend)

# ----------------------------- tiny BERT config ------------------------------
VOCAB = 64
TYPE_VOCAB = 2
MAX_POS = 16
HIDDEN = 32
NUM_HEADS = 2
HEAD_DIM = HIDDEN // NUM_HEADS
INTERMEDIATE = 64
NUM_LAYERS = 2
NUM_LABELS = 2
LN_EPS = 1e-12
OUT_PAD = 128          # lane-dense classifier / output width
NEG_BIG = -1.0e9


def _gelu(x):
    # TODO(synk): HF BERT uses erf-based GELU; tanh approximation keeps the
    # transcendental on the EUP tanh path (numerically very close).
    c = math.sqrt(2.0 / math.pi)
    return 0.5 * x * (1.0 + jnp.tanh(c * (x + 0.044715 * x * x * x)))


def _layernorm(x, g, b):
    mu = jnp.mean(x, axis=-1, keepdims=True)
    xc = x - mu
    var = jnp.mean(xc * xc, axis=-1, keepdims=True)
    return xc * jax.lax.rsqrt(var + LN_EPS) * g + b


# ------------------------ fused whole-model Pallas kernel ---------------------
def _bert_kernel(emb_ref, mask_ref,
                 emb_ln_g_ref, emb_ln_b_ref,
                 qkv_w_ref, qkv_b_ref,
                 ao_w_ref, ao_b_ref, a_ln_g_ref, a_ln_b_ref,
                 fi_w_ref, fi_b_ref, fo_w_ref, fo_b_ref,
                 f_ln_g_ref, f_ln_b_ref,
                 pool_w_ref, pool_b_ref, cls_w_ref, cls_b_ref,
                 probs_ref, *, batch, seq):
    H, D, NH = HIDDEN, HEAD_DIM, NUM_HEADS

    # Embeddings LayerNorm (f32 math; bf16 only feeds the MXU).
    h = _layernorm(emb_ref[...].astype(jnp.float32),
                   emb_ln_g_ref[...], emb_ln_b_ref[...])            # (B*S, H)
    # Block-diagonal additive mask (padding + batch separation), hoisted: used
    # unchanged by every head of every layer.
    add_mask = mask_ref[...]                                         # (B*S, B*S)

    for l in range(NUM_LAYERS):
        # ---- self-attention: fused QKV projection (one bf16 MXU launch, N=3H)
        h_bf = h.astype(jnp.bfloat16)
        qkv = jnp.dot(h_bf, qkv_w_ref[l],
                      preferred_element_type=jnp.float32) + qkv_b_ref[l]  # (B*S, 3H)

        attn = None
        for hh in range(NH):
            c0 = hh * D
            qh = qkv[:, c0:c0 + D].astype(jnp.bfloat16)
            kh = qkv[:, H + c0:H + c0 + D].astype(jnp.bfloat16)
            vh = qkv[:, 2 * H + c0:2 * H + c0 + D].astype(jnp.bfloat16)
            # 1/sqrt(D) scale is folded into the Q weights/bias at pack time.
            s = jax.lax.dot_general(qh, kh, (((1,), (1,)), ((), ())),
                                    preferred_element_type=jnp.float32)  # (B*S, B*S)
            s = s + add_mask
            s = s - jnp.max(s, axis=-1, keepdims=True)
            p = jnp.exp(s)
            p = p * pl.reciprocal(jnp.sum(p, axis=-1, keepdims=True), approx=True)
            ctx = jnp.dot(p.astype(jnp.bfloat16), vh,
                          preferred_element_type=jnp.float32)            # (B*S, D)
            # head merge + output projection fused: sum_h ctx_h @ W_h,
            # W_h packed head-major so this is a leading-axis index.
            part = jnp.dot(ctx.astype(jnp.bfloat16), ao_w_ref[l * NH + hh],
                           preferred_element_type=jnp.float32)           # (B*S, H)
            attn = part if attn is None else attn + part
        h = _layernorm(attn + ao_b_ref[l] + h, a_ln_g_ref[l], a_ln_b_ref[l])

        # ---- feed-forward ----------------------------------------------------
        h_bf = h.astype(jnp.bfloat16)
        ffn = _gelu(jnp.dot(h_bf, fi_w_ref[l],
                            preferred_element_type=jnp.float32) + fi_b_ref[l])
        ffn_out = jnp.dot(ffn.astype(jnp.bfloat16), fo_w_ref[l],
                          preferred_element_type=jnp.float32) + fo_b_ref[l]
        h = _layernorm(ffn_out + h, f_ln_g_ref[l], f_ln_b_ref[l])

    # ---- pooler ([CLS] row of each sequence) + classifier + softmax ----------
    cls_rows = jnp.concatenate([h[b * seq:b * seq + 1, :] for b in range(batch)],
                               axis=0)                                # (B, H)
    pooled = jnp.tanh(jnp.dot(cls_rows.astype(jnp.bfloat16), pool_w_ref[...],
                              preferred_element_type=jnp.float32) + pool_b_ref[...])
    # Lane-dense classifier: weights padded to OUT_PAD lanes, pad-lane bias is
    # -1e9 so softmax assigns them exactly 0 -> full 128-lane unmasked store.
    logits = jnp.dot(pooled.astype(jnp.bfloat16), cls_w_ref[...],
                     preferred_element_type=jnp.float32) + cls_b_ref[...]  # (B, 128)
    logits = logits - jnp.max(logits, axis=-1, keepdims=True)
    e = jnp.exp(logits)
    probs_ref[...] = e * pl.reciprocal(jnp.sum(e, axis=-1, keepdims=True),
                                       approx=True)


def bert_encoder(emb_bf16, add_mask, packed, *, batch, seq):
    """emb_bf16: (B*S, H) bf16; add_mask: (B*S, B*S) f32; packed: weight tuple."""
    kernel = functools.partial(_bert_kernel, batch=batch, seq=seq)
    # Single program, no grid: everything (weights + activations) lives in VMEM
    # for the whole forward pass; no per-step pipeline overhead.
    probs_pad = pl.pallas_call(
        kernel,
        out_shape=jax.ShapeDtypeStruct((batch, OUT_PAD), jnp.float32),
    )(emb_bf16, add_mask, *packed)
    return probs_pad[:, :NUM_LABELS]                                  # (B, 2)


# ------------------------------ parameter init -------------------------------
def init_params(key):
    keys = iter(jax.random.split(key, 128))

    def nrm(shape):
        return 0.02 * jax.random.normal(next(keys), shape, jnp.float32)

    p = {
        "word_emb": nrm((VOCAB, HIDDEN)),
        "pos_emb": nrm((MAX_POS, HIDDEN)),
        "type_emb": nrm((TYPE_VOCAB, HIDDEN)),
        "emb_ln_g": jnp.ones((HIDDEN,), jnp.float32),
        "emb_ln_b": jnp.zeros((HIDDEN,), jnp.float32),
        "layers": [],
        "pooler_w": nrm((HIDDEN, HIDDEN)),
        "pooler_b": jnp.zeros((HIDDEN,), jnp.float32),
        "cls_w": nrm((HIDDEN, NUM_LABELS)),
        "cls_b": jnp.zeros((NUM_LABELS,), jnp.float32),
    }
    for _ in range(NUM_LAYERS):
        p["layers"].append(dict(
            q_w=nrm((HIDDEN, HIDDEN)), q_b=jnp.zeros((HIDDEN,), jnp.float32),
            k_w=nrm((HIDDEN, HIDDEN)), k_b=jnp.zeros((HIDDEN,), jnp.float32),
            v_w=nrm((HIDDEN, HIDDEN)), v_b=jnp.zeros((HIDDEN,), jnp.float32),
            attn_out_w=nrm((HIDDEN, HIDDEN)),
            attn_out_b=jnp.zeros((HIDDEN,), jnp.float32),
            attn_ln_g=jnp.ones((HIDDEN,), jnp.float32),
            attn_ln_b=jnp.zeros((HIDDEN,), jnp.float32),
            ffn_in_w=nrm((HIDDEN, INTERMEDIATE)),
            ffn_in_b=jnp.zeros((INTERMEDIATE,), jnp.float32),
            ffn_out_w=nrm((INTERMEDIATE, HIDDEN)),
            ffn_out_b=jnp.zeros((HIDDEN,), jnp.float32),
            ffn_ln_g=jnp.ones((HIDDEN,), jnp.float32),
            ffn_ln_b=jnp.zeros((HIDDEN,), jnp.float32),
        ))
    return p


def pack_params(p):
    """Stack per-layer weights (bf16 for MXU operands), fuse q/k/v, fold the
    attention scale into Q, pack attn-out weights head-major, pad the
    classifier head to OUT_PAD lanes.  Called ONCE outside the jitted fwd."""
    L = p["layers"]
    scale = 1.0 / math.sqrt(HEAD_DIM)
    bf = lambda x: x.astype(jnp.bfloat16)
    stack_row = lambda name: jnp.stack([l[name][None, :] for l in L]).astype(jnp.float32)

    qkv_w = jnp.stack([jnp.concatenate([l["q_w"] * scale, l["k_w"], l["v_w"]], axis=1)
                       for l in L])                                    # (L, H, 3H)
    qkv_b = jnp.stack([jnp.concatenate([l["q_b"] * scale, l["k_b"], l["v_b"]])[None, :]
                       for l in L]).astype(jnp.float32)                # (L, 1, 3H)
    # head-major output projection weights: (L*NH, D, H)
    ao_w = jnp.stack([l["attn_out_w"].reshape(NUM_HEADS, HEAD_DIM, HIDDEN) for l in L]
                     ).reshape(NUM_LAYERS * NUM_HEADS, HEAD_DIM, HIDDEN)
    fi_w = jnp.stack([l["ffn_in_w"] for l in L])
    fo_w = jnp.stack([l["ffn_out_w"] for l in L])

    # lane-dense classifier head: pad to OUT_PAD output lanes
    cls_w = jnp.zeros((HIDDEN, OUT_PAD), jnp.float32).at[:, :NUM_LABELS].set(p["cls_w"])
    cls_b = jnp.full((1, OUT_PAD), NEG_BIG, jnp.float32).at[0, :NUM_LABELS].set(p["cls_b"])

    return (
        p["emb_ln_g"].reshape(1, HIDDEN), p["emb_ln_b"].reshape(1, HIDDEN),
        bf(qkv_w), qkv_b,
        bf(ao_w), stack_row("attn_out_b"),
        stack_row("attn_ln_g"), stack_row("attn_ln_b"),
        bf(fi_w), stack_row("ffn_in_b"),
        bf(fo_w), stack_row("ffn_out_b"),
        stack_row("ffn_ln_g"), stack_row("ffn_ln_b"),
        bf(p["pooler_w"]), p["pooler_b"].reshape(1, HIDDEN),
        bf(cls_w), cls_b,
    )


# -------------------------------- forward pass --------------------------------
@jax.jit
def bert_forward(embed_params, packed, batch_seqs, batch_seq_masks,
                 batch_seq_segments, labels):
    B, S = batch_seqs.shape

    # embeddings: table gathers are XLA glue; everything after runs in the kernel
    word = jnp.take(embed_params["word_emb"], batch_seqs, axis=0)      # (B,S,H)
    pos = embed_params["pos_emb"][:S][None, :, :]                      # (1,S,H)
    typ = jnp.take(embed_params["type_emb"], batch_seq_segments, axis=0)
    emb = (word + pos + typ).reshape(B * S, HIDDEN).astype(jnp.bfloat16)

    # additive attention mask with the batch folded in: block-diagonal (-1e9
    # across sequences) + HF-style -10000 on padded keys.  Shape (B*S, B*S).
    key_pad = (1.0 - batch_seq_masks.astype(jnp.float32).reshape(-1)) * -10000.0
    bid = jnp.repeat(jnp.arange(B), S)
    same = bid[:, None] == bid[None, :]
    add_mask = jnp.where(same, key_pad[None, :], NEG_BIG).astype(jnp.float32)

    probs = bert_encoder(emb, add_mask, packed, batch=B, seq=S)        # (B, 2)

    # Cross-entropy loss (BertForSequenceClassification computes it; the
    # original module discards it and returns only the probabilities).
    log_probs = jnp.log(jnp.maximum(probs, 1e-30))
    loss = -jnp.mean(jnp.take_along_axis(log_probs, labels[:, None], axis=-1))
    return probs, loss


# ----------------------------------- driver -----------------------------------
if __name__ == "__main__":
    key = jax.random.PRNGKey(0)
    k_params, k_ids, _ = jax.random.split(key, 3)

    B, S = 2, 8
    params = init_params(k_params)
    embed_params = {"word_emb": params["word_emb"],
                    "pos_emb": params["pos_emb"],
                    "type_emb": params["type_emb"]}
    packed = pack_params(params)          # packed once, outside the jitted fwd

    batch_seqs = jax.random.randint(k_ids, (B, S), 0, VOCAB, dtype=jnp.int32)
    batch_seq_masks = jnp.array(
        [[1] * S, [1] * (S - 3) + [0] * 3], dtype=jnp.int32)          # pad batch 1
    batch_seq_segments = jnp.concatenate(
        [jnp.zeros((B, S // 2), jnp.int32), jnp.ones((B, S // 2), jnp.int32)],
        axis=1)
    labels = jnp.array([0, 1], dtype=jnp.int32)

    probs, loss = bert_forward(embed_params, packed, batch_seqs,
                               batch_seq_masks, batch_seq_segments, labels)
    jax.block_until_ready((probs, loss))
    assert probs.shape == (B, NUM_LABELS)
    assert bool(jnp.all(jnp.isfinite(probs)))
    assert bool(jnp.all(jnp.abs(jnp.sum(probs, axis=-1) - 1.0) < 1e-2))
    print("KERNEL_OK")
</pallas_src>

<mosaic_0001>
module attributes {stable_mosaic.version = 11 : i64} {
  func.func @_bert_kernel(%arg0: memref<16x32xbf16, #tpu.memory_space<vmem>>, %arg1: memref<16x16xf32, #tpu.memory_space<vmem>>, %arg2: memref<1x32xf32, #tpu.memory_space<vmem>>, %arg3: memref<1x32xf32, #tpu.memory_space<vmem>>, %arg4: memref<2x32x96xbf16, #tpu.memory_space<vmem>>, %arg5: memref<2x1x96xf32, #tpu.memory_space<vmem>>, %arg6: memref<4x16x32xbf16, #tpu.memory_space<vmem>>, %arg7: memref<2x1x32xf32, #tpu.memory_space<vmem>>, %arg8: memref<2x1x32xf32, #tpu.memory_space<vmem>>, %arg9: memref<2x1x32xf32, #tpu.memory_space<vmem>>, %arg10: memref<2x32x64xbf16, #tpu.memory_space<vmem>>, %arg11: memref<2x1x64xf32, #tpu.memory_space<vmem>>, %arg12: memref<2x64x32xbf16, #tpu.memory_space<vmem>>, %arg13: memref<2x1x32xf32, #tpu.memory_space<vmem>>, %arg14: memref<2x1x32xf32, #tpu.memory_space<vmem>>, %arg15: memref<2x1x32xf32, #tpu.memory_space<vmem>>, %arg16: memref<32x32xbf16, #tpu.memory_space<vmem>>, %arg17: memref<1x32xf32, #tpu.memory_space<vmem>>, %arg18: memref<32x128xbf16, #tpu.memory_space<vmem>>, %arg19: memref<1x128xf32, #tpu.memory_space<vmem>>, %arg20: memref<2x128xf32, #tpu.memory_space<vmem>>) attributes {dimension_semantics = [], scalar_prefetch = 0 : i64, scratch_operands = 0 : i64, tpu.core_type = #tpu.core_type<tc>} {
    %c0 = arith.constant 0 : index
    %c0_0 = arith.constant 0 : index
    %0 = vector.load %arg0[%c0, %c0_0] : memref<16x32xbf16, #tpu.memory_space<vmem>>, vector<16x32xbf16>
    %1 = arith.extf %0 : vector<16x32xbf16> to vector<16x32xf32>
    %c0_1 = arith.constant 0 : index
    %c0_2 = arith.constant 0 : index
    %2 = vector.load %arg2[%c0_1, %c0_2] : memref<1x32xf32, #tpu.memory_space<vmem>>, vector<1x32xf32>
    %c0_3 = arith.constant 0 : index
    %c0_4 = arith.constant 0 : index
    %3 = vector.load %arg3[%c0_3, %c0_4] : memref<1x32xf32, #tpu.memory_space<vmem>>, vector<1x32xf32>
    %cst = arith.constant dense<0.000000e+00> : vector<16xf32>
    %4 = vector.multi_reduction <add>, %1, %cst [1] : vector<16x32xf32> to vector<16xf32>
    %5 = vector.shape_cast %4 : vector<16xf32> to vector<16x1xf32>
    %cst_5 = arith.constant 3.200000e+01 : f32
    %6 = vector.broadcast %cst_5 : f32 to vector<16x1xf32>
    %7 = arith.divf %5, %6 : vector<16x1xf32>
    %8 = vector.broadcast %7 : vector<16x1xf32> to vector<16x32xf32>
    %9 = arith.subf %1, %8 : vector<16x32xf32>
    %10 = arith.mulf %9, %9 : vector<16x32xf32>
    %cst_6 = arith.constant dense<0.000000e+00> : vector<16xf32>
    %11 = vector.multi_reduction <add>, %10, %cst_6 [1] : vector<16x32xf32> to vector<16xf32>
    %12 = vector.shape_cast %11 : vector<16xf32> to vector<16x1xf32>
    %cst_7 = arith.constant 3.200000e+01 : f32
    %13 = vector.broadcast %cst_7 : f32 to vector<16x1xf32>
    %14 = arith.divf %12, %13 : vector<16x1xf32>
    %cst_8 = arith.constant 9.99999996E-13 : f32
    %15 = vector.broadcast %cst_8 : f32 to vector<16x1xf32>
    %16 = arith.addf %14, %15 : vector<16x1xf32>
    %17 = math.rsqrt %16 : vector<16x1xf32>
    %18 = vector.broadcast %17 : vector<16x1xf32> to vector<16x32xf32>
    %19 = arith.mulf %9, %18 : vector<16x32xf32>
    %20 = vector.broadcast %2 : vector<1x32xf32> to vector<16x32xf32>
    %21 = arith.mulf %19, %20 : vector<16x32xf32>
    %22 = vector.broadcast %3 : vector<1x32xf32> to vector<16x32xf32>
    %23 = arith.addf %21, %22 : vector<16x32xf32>
    %c0_9 = arith.constant 0 : index
    %c0_10 = arith.constant 0 : index
    %24 = vector.load %arg1[%c0_9, %c0_10] : memref<16x16xf32, #tpu.memory_space<vmem>>, vector<16x16xf32>
    %25 = arith.truncf %23 : vector<16x32xf32> to vector<16x32xbf16>
    %c0_11 = arith.constant 0 : index
    %c0_12 = arith.constant 0 : index
    %c0_13 = arith.constant 0 : index
    %26 = vector.load %arg4[%c0_11, %c0_12, %c0_13] : memref<2x32x96xbf16, #tpu.memory_space<vmem>>, vector<1x32x96xbf16>
    %27 = vector.shape_cast %26 : vector<1x32x96xbf16> to vector<32x96xbf16>
    %cst_14 = arith.constant dense<0.000000e+00> : vector<16x96xf32>
    %28 = tpu.matmul %25, %27, %cst_14 {dimension_numbers = #tpu.dot_dimension_numbers<[1], [0], [0], [1], [0, 0, 1, 1], [], []>} : vector<16x32xbf16>, vector<32x96xbf16>, vector<16x96xf32> -> vector<16x96xf32>
    %c0_15 = arith.constant 0 : index
    %c0_16 = arith.constant 0 : index
    %c0_17 = arith.constant 0 : index
    %29 = vector.load %arg5[%c0_15, %c0_16, %c0_17] : memref<2x1x96xf32, #tpu.memory_space<vmem>>, vector<1x1x96xf32>
    %30 = vector.shape_cast %29 : vector<1x1x96xf32> to vector<1x96xf32>
    %31 = vector.broadcast %30 : vector<1x96xf32> to vector<16x96xf32>
    %32 = arith.addf %28, %31 : vector<16x96xf32>
    %33 = vector.extract_strided_slice %32 {offsets = [0, 0], sizes = [16, 16], strides = [1, 1]} : vector<16x96xf32> to vector<16x16xf32>
    %34 = arith.truncf %33 : vector<16x16xf32> to vector<16x16xbf16>
    %35 = vector.extract_strided_slice %32 {offsets = [0, 32], sizes = [16, 16], strides = [1, 1]} : vector<16x96xf32> to vector<16x16xf32>
    %36 = arith.truncf %35 : vector<16x16xf32> to vector<16x16xbf16>
    %37 = vector.extract_strided_slice %32 {offsets = [0, 64], sizes = [16, 16], strides = [1, 1]} : vector<16x96xf32> to vector<16x16xf32>
    %38 = arith.truncf %37 : vector<16x16xf32> to vector<16x16xbf16>
    %cst_18 = arith.constant dense<0.000000e+00> : vector<16x16xf32>
    %39 = tpu.matmul %34, %36, %cst_18 {dimension_numbers = #tpu.dot_dimension_numbers<[1], [1], [0], [0], [0, 0, 1, 0], [], []>} : vector<16x16xbf16>, vector<16x16xbf16>, vector<16x16xf32> -> vector<16x16xf32>
    %40 = arith.addf %39, %24 : vector<16x16xf32>
    %cst_19 = arith.constant dense<0xFF800000> : vector<16xf32>
    %41 = vector.multi_reduction <maximumf>, %40, %cst_19 [1] : vector<16x16xf32> to vector<16xf32>
    %42 = vector.shape_cast %41 : vector<16xf32> to vector<16x1xf32>
    %43 = vector.broadcast %42 : vector<16x1xf32> to vector<16x16xf32>
    %44 = arith.subf %40, %43 : vector<16x16xf32>
    %45 = math.exp %44 : vector<16x16xf32>
    %cst_20 = arith.constant dense<0.000000e+00> : vector<16xf32>
    %46 = vector.multi_reduction <add>, %45, %cst_20 [1] : vector<16x16xf32> to vector<16xf32>
    %47 = vector.shape_cast %46 : vector<16xf32> to vector<16x1xf32>
    %48 = tpu.reciprocal %47 {approx = true} : vector<16x1xf32> -> vector<16x1xf32>
    %49 = vector.broadcast %48 : vector<16x1xf32> to vector<16x16xf32>
    %50 = arith.mulf %45, %49 : vector<16x16xf32>
    %51 = arith.truncf %50 : vector<16x16xf32> to vector<16x16xbf16>
    %cst_21 = arith.constant dense<0.000000e+00> : vector<16x16xf32>
    %52 = tpu.matmul %51, %38, %cst_21 {dimension_numbers = #tpu.dot_dimension_numbers<[1], [0], [0], [1], [0, 0, 1, 1], [], []>} : vector<16x16xbf16>, vector<16x16xbf16>, vector<16x16xf32> -> vector<16x16xf32>
    %53 = arith.truncf %52 : vector<16x16xf32> to vector<16x16xbf16>
    %c0_22 = arith.constant 0 : index
    %c0_23 = arith.constant 0 : index
    %c0_24 = arith.constant 0 : index
    %54 = vector.load %arg6[%c0_22, %c0_23, %c0_24] : memref<4x16x32xbf16, #tpu.memory_space<vmem>>, vector<1x16x32xbf16>
    %55 = vector.shape_cast %54 : vector<1x16x32xbf16> to vector<16x32xbf16>
    %cst_25 = arith.constant dense<0.000000e+00> : vector<16x32xf32>
    %56 = tpu.matmul %53, %55, %cst_25 {dimension_numbers = #tpu.dot_dimension_numbers<[1], [0], [0], [1], [0, 0, 1, 1], [], []>} : vector<16x16xbf16>, vector<16x32xbf16>, vector<16x32xf32> -> vector<16x32xf32>
    %57 = vector.extract_strided_slice %32 {offsets = [0, 16], sizes = [16, 16], strides = [1, 1]} : vector<16x96xf32> to vector<16x16xf32>
    %58 = arith.truncf %57 : vector<16x16xf32> to vector<16x16xbf16>
    %59 = vector.extract_strided_slice %32 {offsets = [0, 48], sizes = [16, 16], strides = [1, 1]} : vector<16x96xf32> to vector<16x16xf32>
    %60 = arith.truncf %59 : vector<16x16xf32> to vector<16x16xbf16>
    %61 = vector.extract_strided_slice %32 {offsets = [0, 80], sizes = [16, 16], strides = [1, 1]} : vector<16x96xf32> to vector<16x16xf32>
    %62 = arith.truncf %61 : vector<16x16xf32> to vector<16x16xbf16>
    %cst_26 = arith.constant dense<0.000000e+00> : vector<16x16xf32>
    %63 = tpu.matmul %58, %60, %cst_26 {dimension_numbers = #tpu.dot_dimension_numbers<[1], [1], [0], [0], [0, 0, 1, 0], [], []>} : vector<16x16xbf16>, vector<16x16xbf16>, vector<16x16xf32> -> vector<16x16xf32>
    %64 = arith.addf %63, %24 : vector<16x16xf32>
    %cst_27 = arith.constant dense<0xFF800000> : vector<16xf32>
    %65 = vector.multi_reduction <maximumf>, %64, %cst_27 [1] : vector<16x16xf32> to vector<16xf32>
    %66 = vector.shape_cast %65 : vector<16xf32> to vector<16x1xf32>
    %67 = vector.broadcast %66 : vector<16x1xf32> to vector<16x16xf32>
    %68 = arith.subf %64, %67 : vector<16x16xf32>
    %69 = math.exp %68 : vector<16x16xf32>
    %cst_28 = arith.constant dense<0.000000e+00> : vector<16xf32>
    %70 = vector.multi_reduction <add>, %69, %cst_28 [1] : vector<16x16xf32> to vector<16xf32>
    %71 = vector.shape_cast %70 : vector<16xf32> to vector<16x1xf32>
    %72 = tpu.reciprocal %71 {approx = true} : vector<16x1xf32> -> vector<16x1xf32>
    %73 = vector.broadcast %72 : vector<16x1xf32> to vector<16x16xf32>
    %74 = arith.mulf %69, %73 : vector<16x16xf32>
    %75 = arith.truncf %74 : vector<16x16xf32> to vector<16x16xbf16>
    %cst_29 = arith.constant dense<0.000000e+00> : vector<16x16xf32>
    %76 = tpu.matmul %75, %62, %cst_29 {dimension_numbers = #tpu.dot_dimension_numbers<[1], [0], [0], [1], [0, 0, 1, 1], [], []>} : vector<16x16xbf16>, vector<16x16xbf16>, vector<16x16xf32> -> vector<16x16xf32>
    %77 = arith.truncf %76 : vector<16x16xf32> to vector<16x16xbf16>
    %c1 = arith.constant 1 : index
    %c0_30 = arith.constant 0 : index
    %c0_31 = arith.constant 0 : index
    %78 = vector.load %arg6[%c1, %c0_30, %c0_31] : memref<4x16x32xbf16, #tpu.memory_space<vmem>>, vector<1x16x32xbf16>
    %79 = vector.shape_cast %78 : vector<1x16x32xbf16> to vector<16x32xbf16>
    %cst_32 = arith.constant dense<0.000000e+00> : vector<16x32xf32>
    %80 = tpu.matmul %77, %79, %cst_32 {dimension_numbers = #tpu.dot_dimension_numbers<[1], [0], [0], [1], [0, 0, 1, 1], [], []>} : vector<16x16xbf16>, vector<16x32xbf16>, vector<16x32xf32> -> vector<16x32xf32>
    %81 = arith.addf %56, %80 : vector<16x32xf32>
    %c0_33 = arith.constant 0 : index
    %c0_34 = arith.constant 0 : index
    %c0_35 = arith.constant 0 : index
    %82 = vector.load %arg7[%c0_33, %c0_34, %c0_35] : memref<2x1x32xf32, #tpu.memory_space<vmem>>, vector<1x1x32xf32>
    %83 = vector.shape_cast %82 : vector<1x1x32xf32> to vector<1x32xf32>
    %84 = vector.broadcast %83 : vector<1x32xf32> to vector<16x32xf32>
    %85 = arith.addf %81, %84 : vector<16x32xf32>
    %86 = arith.addf %85, %23 : vector<16x32xf32>
    %c0_36 = arith.constant 0 : index
    %c0_37 = arith.constant 0 : index
    %c0_38 = arith.constant 0 : index
    %87 = vector.load %arg8[%c0_36, %c0_37, %c0_38] : memref<2x1x32xf32, #tpu.memory_space<vmem>>, vector<1x1x32xf32>
    %88 = vector.shape_cast %87 : vector<1x1x32xf32> to vector<1x32xf32>
    %c0_39 = arith.constant 0 : index
    %c0_40 = arith.constant 0 : index
    %c0_41 = arith.constant 0 : index
    %89 = vector.load %arg9[%c0_39, %c0_40, %c0_41] : memref<2x1x32xf32, #tpu.memory_space<vmem>>, vector<1x1x32xf32>
    %90 = vector.shape_cast %89 : vector<1x1x32xf32> to vector<1x32xf32>
    %cst_42 = arith.constant dense<0.000000e+00> : vector<16xf32>
    %91 = vector.multi_reduction <add>, %86, %cst_42 [1] : vector<16x32xf32> to vector<16xf32>
    %92 = vector.shape_cast %91 : vector<16xf32> to vector<16x1xf32>
    %cst_43 = arith.constant 3.200000e+01 : f32
    %93 = vector.broadcast %cst_43 : f32 to vector<16x1xf32>
    %94 = arith.divf %92, %93 : vector<16x1xf32>
    %95 = vector.broadcast %94 : vector<16x1xf32> to vector<16x32xf32>
    %96 = arith.subf %86, %95 : vector<16x32xf32>
    %97 = arith.mulf %96, %96 : vector<16x32xf32>
    %cst_44 = arith.constant dense<0.000000e+00> : vector<16xf32>
    %98 = vector.multi_reduction <add>, %97, %cst_44 [1] : vector<16x32xf32> to vector<16xf32>
    %99 = vector.shape_cast %98 : vector<16xf32> to vector<16x1xf32>
    %cst_45 = arith.constant 3.200000e+01 : f32
    %100 = vector.broadcast %cst_45 : f32 to vector<16x1xf32>
    %101 = arith.divf %99, %100 : vector<16x1xf32>
    %cst_46 = arith.constant 9.99999996E-13 : f32
    %102 = vector.broadcast %cst_46 : f32 to vector<16x1xf32>
    %103 = arith.addf %101, %102 : vector<16x1xf32>
    %104 = math.rsqrt %103 : vector<16x1xf32>
    %105 = vector.broadcast %104 : vector<16x1xf32> to vector<16x32xf32>
    %106 = arith.mulf %96, %105 : vector<16x32xf32>
    %107 = vector.broadcast %88 : vector<1x32xf32> to vector<16x32xf32>
    %108 = arith.mulf %106, %107 : vector<16x32xf32>
    %109 = vector.broadcast %90 : vector<1x32xf32> to vector<16x32xf32>
    %110 = arith.addf %108, %109 : vector<16x32xf32>
    %111 = arith.truncf %110 : vector<16x32xf32> to vector<16x32xbf16>
    %c0_47 = arith.constant 0 : index
    %c0_48 = arith.constant 0 : index
    %c0_49 = arith.constant 0 : index
    %112 = vector.load %arg10[%c0_47, %c0_48, %c0_49] : memref<2x32x64xbf16, #tpu.memory_space<vmem>>, vector<1x32x64xbf16>
    %113 = vector.shape_cast %112 : vector<1x32x64xbf16> to vector<32x64xbf16>
    %cst_50 = arith.constant dense<0.000000e+00> : vector<16x64xf32>
    %114 = tpu.matmul %111, %113, %cst_50 {dimension_numbers = #tpu.dot_dimension_numbers<[1], [0], [0], [1], [0, 0, 1, 1], [], []>} : vector<16x32xbf16>, vector<32x64xbf16>, vector<16x64xf32> -> vector<16x64xf32>
    %c0_51 = arith.constant 0 : index
    %c0_52 = arith.constant 0 : index
    %c0_53 = arith.constant 0 : index
    %115 = vector.load %arg11[%c0_51, %c0_52, %c0_53] : memref<2x1x64xf32, #tpu.memory_space<vmem>>, vector<1x1x64xf32>
    %116 = vector.shape_cast %115 : vector<1x1x64xf32> to vector<1x64xf32>
    %117 = vector.broadcast %116 : vector<1x64xf32> to vector<16x64xf32>
    %118 = arith.addf %114, %117 : vector<16x64xf32>
    %cst_54 = arith.constant 5.000000e-01 : f32
    %119 = vector.broadcast %cst_54 : f32 to vector<16x64xf32>
    %120 = arith.mulf %119, %118 : vector<16x64xf32>
    %cst_55 = arith.constant 4.471500e-02 : f32
    %121 = vector.broadcast %cst_55 : f32 to vector<16x64xf32>
    %122 = arith.mulf %121, %118 : vector<16x64xf32>
    %123 = arith.mulf %122, %118 : vector<16x64xf32>
    %124 = arith.mulf %123, %118 : vector<16x64xf32>
    %125 = arith.addf %118, %124 : vector<16x64xf32>
    %cst_56 = arith.constant 0.797884583 : f32
    %126 = vector.broadcast %cst_56 : f32 to vector<16x64xf32>
    %127 = arith.mulf %126, %125 : vector<16x64xf32>
    %128 = math.tanh %127 : vector<16x64xf32>
    %cst_57 = arith.constant 1.000000e+00 : f32
    %129 = vector.broadcast %cst_57 : f32 to vector<16x64xf32>
    %130 = arith.addf %129, %128 : vector<16x64xf32>
    %131 = arith.mulf %120, %130 : vector<16x64xf32>
    %132 = arith.truncf %131 : vector<16x64xf32> to vector<16x64xbf16>
    %c0_58 = arith.constant 0 : index
    %c0_59 = arith.constant 0 : index
    %c0_60 = arith.constant 0 : index
    %133 = vector.load %arg12[%c0_58, %c0_59, %c0_60] : memref<2x64x32xbf16, #tpu.memory_space<vmem>>, vector<1x64x32xbf16>
    %134 = vector.shape_cast %133 : vector<1x64x32xbf16> to vector<64x32xbf16>
    %cst_61 = arith.constant dense<0.000000e+00> : vector<16x32xf32>
    %135 = tpu.matmul %132, %134, %cst_61 {dimension_numbers = #tpu.dot_dimension_numbers<[1], [0], [0], [1], [0, 0, 1, 1], [], []>} : vector<16x64xbf16>, vector<64x32xbf16>, vector<16x32xf32> -> vector<16x32xf32>
    %c0_62 = arith.constant 0 : index
    %c0_63 = arith.constant 0 : index
    %c0_64 = arith.constant 0 : index
    %136 = vector.load %arg13[%c0_62, %c0_63, %c0_64] : memref<2x1x32xf32, #tpu.memory_space<vmem>>, vector<1x1x32xf32>
    %137 = vector.shape_cast %136 : vector<1x1x32xf32> to vector<1x32xf32>
    %138 = vector.broadcast %137 : vector<1x32xf32> to vector<16x32xf32>
    %139 = arith.addf %135, %138 : vector<16x32xf32>
    %140 = arith.addf %139, %110 : vector<16x32xf32>
    %c0_65 = arith.constant 0 : index
    %c0_66 = arith.constant 0 : index
    %c0_67 = arith.constant 0 : index
    %141 = vector.load %arg14[%c0_65, %c0_66, %c0_67] : memref<2x1x32xf32, #tpu.memory_space<vmem>>, vector<1x1x32xf32>
    %142 = vector.shape_cast %141 : vector<1x1x32xf32> to vector<1x32xf32>
    %c0_68 = arith.constant 0 : index
    %c0_69 = arith.constant 0 : index
    %c0_70 = arith.constant 0 : index
    %143 = vector.load %arg15[%c0_68, %c0_69, %c0_70] : memref<2x1x32xf32, #tpu.memory_space<vmem>>, vector<1x1x32xf32>
    %144 = vector.shape_cast %143 : vector<1x1x32xf32> to vector<1x32xf32>
    %cst_71 = arith.constant dense<0.000000e+00> : vector<16xf32>
    %145 = vector.multi_reduction <add>, %140, %cst_71 [1] : vector<16x32xf32> to vector<16xf32>
    %146 = vector.shape_cast %145 : vector<16xf32> to vector<16x1xf32>
    %cst_72 = arith.constant 3.200000e+01 : f32
    %147 = vector.broadcast %cst_72 : f32 to vector<16x1xf32>
    %148 = arith.divf %146, %147 : vector<16x1xf32>
    %149 = vector.broadcast %148 : vector<16x1xf32> to vector<16x32xf32>
    %150 = arith.subf %140, %149 : vector<16x32xf32>
    %151 = arith.mulf %150, %150 : vector<16x32xf32>
    %cst_73 = arith.constant dense<0.000000e+00> : vector<16xf32>
    %152 = vector.multi_reduction <add>, %151, %cst_73 [1] : vector<16x32xf32> to vector<16xf32>
    %153 = vector.shape_cast %152 : vector<16xf32> to vector<16x1xf32>
    %cst_74 = arith.constant 3.200000e+01 : f32
    %154 = vector.broadcast %cst_74 : f32 to vector<16x1xf32>
    %155 = arith.divf %153, %154 : vector<16x1xf32>
    %cst_75 = arith.constant 9.99999996E-13 : f32
    %156 = vector.broadcast %cst_75 : f32 to vector<16x1xf32>
    %157 = arith.addf %155, %156 : vector<16x1xf32>
    %158 = math.rsqrt %157 : vector<16x1xf32>
    %159 = vector.broadcast %158 : vector<16x1xf32> to vector<16x32xf32>
    %160 = arith.mulf %150, %159 : vector<16x32xf32>
    %161 = vector.broadcast %142 : vector<1x32xf32> to vector<16x32xf32>
    %162 = arith.mulf %160, %161 : vector<16x32xf32>
    %163 = vector.broadcast %144 : vector<1x32xf32> to vector<16x32xf32>
    %164 = arith.addf %162, %163 : vector<16x32xf32>
    %165 = arith.truncf %164 : vector<16x32xf32> to vector<16x32xbf16>
    %c1_76 = arith.constant 1 : index
    %c0_77 = arith.constant 0 : index
    %c0_78 = arith.constant 0 : index
    %166 = vector.load %arg4[%c1_76, %c0_77, %c0_78] : memref<2x32x96xbf16, #tpu.memory_space<vmem>>, vector<1x32x96xbf16>
    %167 = vector.shape_cast %166 : vector<1x32x96xbf16> to vector<32x96xbf16>
    %cst_79 = arith.constant dense<0.000000e+00> : vector<16x96xf32>
    %168 = tpu.matmul %165, %167, %cst_79 {dimension_numbers = #tpu.dot_dimension_numbers<[1], [0], [0], [1], [0, 0, 1, 1], [], []>} : vector<16x32xbf16>, vector<32x96xbf16>, vector<16x96xf32> -> vector<16x96xf32>
    %c1_80 = arith.constant 1 : index
    %c0_81 = arith.constant 0 : index
    %c0_82 = arith.constant 0 : index
    %169 = vector.load %arg5[%c1_80, %c0_81, %c0_82] : memref<2x1x96xf32, #tpu.memory_space<vmem>>, vector<1x1x96xf32>
    %170 = vector.shape_cast %169 : vector<1x1x96xf32> to vector<1x96xf32>
    %171 = vector.broadcast %170 : vector<1x96xf32> to vector<16x96xf32>
    %172 = arith.addf %168, %171 : vector<16x96xf32>
    %173 = vector.extract_strided_slice %172 {offsets = [0, 0], sizes = [16, 16], strides = [1, 1]} : vector<16x96xf32> to vector<16x16xf32>
    %174 = arith.truncf %173 : vector<16x16xf32> to vector<16x16xbf16>
    %175 = vector.extract_strided_slice %172 {offsets = [0, 32], sizes = [16, 16], strides = [1, 1]} : vector<16x96xf32> to vector<16x16xf32>
    %176 = arith.truncf %175 : vector<16x16xf32> to vector<16x16xbf16>
    %177 = vector.extract_strided_slice %172 {offsets = [0, 64], sizes = [16, 16], strides = [1, 1]} : vector<16x96xf32> to vector<16x16xf32>
    %178 = arith.truncf %177 : vector<16x16xf32> to vector<16x16xbf16>
    %cst_83 = arith.constant dense<0.000000e+00> : vector<16x16xf32>
    %179 = tpu.matmul %174, %176, %cst_83 {dimension_numbers = #tpu.dot_dimension_numbers<[1], [1], [0], [0], [0, 0, 1, 0], [], []>} : vector<16x16xbf16>, vector<16x16xbf16>, vector<16x16xf32> -> vector<16x16xf32>
    %180 = arith.addf %179, %24 : vector<16x16xf32>
    %cst_84 = arith.constant dense<0xFF800000> : vector<16xf32>
    %181 = vector.multi_reduction <maximumf>, %180, %cst_84 [1] : vector<16x16xf32> to vector<16xf32>
    %182 = vector.shape_cast %181 : vector<16xf32> to vector<16x1xf32>
    %183 = vector.broadcast %182 : vector<16x1xf32> to vector<16x16xf32>
    %184 = arith.subf %180, %183 : vector<16x16xf32>
    %185 = math.exp %184 : vector<16x16xf32>
    %cst_85 = arith.constant dense<0.000000e+00> : vector<16xf32>
    %186 = vector.multi_reduction <add>, %185, %cst_85 [1] : vector<16x16xf32> to vector<16xf32>
    %187 = vector.shape_cast %186 : vector<16xf32> to vector<16x1xf32>
    %188 = tpu.reciprocal %187 {approx = true} : vector<16x1xf32> -> vector<16x1xf32>
    %189 = vector.broadcast %188 : vector<16x1xf32> to vector<16x16xf32>
    %190 = arith.mulf %185, %189 : vector<16x16xf32>
    %191 = arith.truncf %190 : vector<16x16xf32> to vector<16x16xbf16>
    %cst_86 = arith.constant dense<0.000000e+00> : vector<16x16xf32>
    %192 = tpu.matmul %191, %178, %cst_86 {dimension_numbers = #tpu.dot_dimension_numbers<[1], [0], [0], [1], [0, 0, 1, 1], [], []>} : vector<16x16xbf16>, vector<16x16xbf16>, vector<16x16xf32> -> vector<16x16xf32>
    %193 = arith.truncf %192 : vector<16x16xf32> to vector<16x16xbf16>
    %c2 = arith.constant 2 : index
    %c0_87 = arith.constant 0 : index
    %c0_88 = arith.constant 0 : index
    %194 = vector.load %arg6[%c2, %c0_87, %c0_88] : memref<4x16x32xbf16, #tpu.memory_space<vmem>>, vector<1x16x32xbf16>
    %195 = vector.shape_cast %194 : vector<1x16x32xbf16> to vector<16x32xbf16>
    %cst_89 = arith.constant dense<0.000000e+00> : vector<16x32xf32>
    %196 = tpu.matmul %193, %195, %cst_89 {dimension_numbers = #tpu.dot_dimension_numbers<[1], [0], [0], [1], [0, 0, 1, 1], [], []>} : vector<16x16xbf16>, vector<16x32xbf16>, vector<16x32xf32> -> vector<16x32xf32>
    %197 = vector.extract_strided_slice %172 {offsets = [0, 16], sizes = [16, 16], strides = [1, 1]} : vector<16x96xf32> to vector<16x16xf32>
    %198 = arith.truncf %197 : vector<16x16xf32> to vector<16x16xbf16>
    %199 = vector.extract_strided_slice %172 {offsets = [0, 48], sizes = [16, 16], strides = [1, 1]} : vector<16x96xf32> to vector<16x16xf32>
    %200 = arith.truncf %199 : vector<16x16xf32> to vector<16x16xbf16>
    %201 = vector.extract_strided_slice %172 {offsets = [0, 80], sizes = [16, 16], strides = [1, 1]} : vector<16x96xf32> to vector<16x16xf32>
    %202 = arith.truncf %201 : vector<16x16xf32> to vector<16x16xbf16>
    %cst_90 = arith.constant dense<0.000000e+00> : vector<16x16xf32>
    %203 = tpu.matmul %198, %200, %cst_90 {dimension_numbers = #tpu.dot_dimension_numbers<[1], [1], [0], [0], [0, 0, 1, 0], [], []>} : vector<16x16xbf16>, vector<16x16xbf16>, vector<16x16xf32> -> vector<16x16xf32>
    %204 = arith.addf %203, %24 : vector<16x16xf32>
    %cst_91 = arith.constant dense<0xFF800000> : vector<16xf32>
    %205 = vector.multi_reduction <maximumf>, %204, %cst_91 [1] : vector<16x16xf32> to vector<16xf32>
    %206 = vector.shape_cast %205 : vector<16xf32> to vector<16x1xf32>
    %207 = vector.broadcast %206 : vector<16x1xf32> to vector<16x16xf32>
    %208 = arith.subf %204, %207 : vector<16x16xf32>
    %209 = math.exp %208 : vector<16x16xf32>
    %cst_92 = arith.constant dense<0.000000e+00> : vector<16xf32>
    %210 = vector.multi_reduction <add>, %209, %cst_92 [1] : vector<16x16xf32> to vector<16xf32>
    %211 = vector.shape_cast %210 : vector<16xf32> to vector<16x1xf32>
    %212 = tpu.reciprocal %211 {approx = true} : vector<16x1xf32> -> vector<16x1xf32>
    %213 = vector.broadcast %212 : vector<16x1xf32> to vector<16x16xf32>
    %214 = arith.mulf %209, %213 : vector<16x16xf32>
    %215 = arith.truncf %214 : vector<16x16xf32> to vector<16x16xbf16>
    %cst_93 = arith.constant dense<0.000000e+00> : vector<16x16xf32>
    %216 = tpu.matmul %215, %202, %cst_93 {dimension_numbers = #tpu.dot_dimension_numbers<[1], [0], [0], [1], [0, 0, 1, 1], [], []>} : vector<16x16xbf16>, vector<16x16xbf16>, vector<16x16xf32> -> vector<16x16xf32>
    %217 = arith.truncf %216 : vector<16x16xf32> to vector<16x16xbf16>
    %c3 = arith.constant 3 : index
    %c0_94 = arith.constant 0 : index
    %c0_95 = arith.constant 0 : index
    %218 = vector.load %arg6[%c3, %c0_94, %c0_95] : memref<4x16x32xbf16, #tpu.memory_space<vmem>>, vector<1x16x32xbf16>
    %219 = vector.shape_cast %218 : vector<1x16x32xbf16> to vector<16x32xbf16>
    %cst_96 = arith.constant dense<0.000000e+00> : vector<16x32xf32>
    %220 = tpu.matmul %217, %219, %cst_96 {dimension_numbers = #tpu.dot_dimension_numbers<[1], [0], [0], [1], [0, 0, 1, 1], [], []>} : vector<16x16xbf16>, vector<16x32xbf16>, vector<16x32xf32> -> vector<16x32xf32>
    %221 = arith.addf %196, %220 : vector<16x32xf32>
    %c1_97 = arith.constant 1 : index
    %c0_98 = arith.constant 0 : index
    %c0_99 = arith.constant 0 : index
    %222 = vector.load %arg7[%c1_97, %c0_98, %c0_99] : memref<2x1x32xf32, #tpu.memory_space<vmem>>, vector<1x1x32xf32>
    %223 = vector.shape_cast %222 : vector<1x1x32xf32> to vector<1x32xf32>
    %224 = vector.broadcast %223 : vector<1x32xf32> to vector<16x32xf32>
    %225 = arith.addf %221, %224 : vector<16x32xf32>
    %226 = arith.addf %225, %164 : vector<16x32xf32>
    %c1_100 = arith.constant 1 : index
    %c0_101 = arith.constant 0 : index
    %c0_102 = arith.constant 0 : index
    %227 = vector.load %arg8[%c1_100, %c0_101, %c0_102] : memref<2x1x32xf32, #tpu.memory_space<vmem>>, vector<1x1x32xf32>
    %228 = vector.shape_cast %227 : vector<1x1x32xf32> to vector<1x32xf32>
    %c1_103 = arith.constant 1 : index
    %c0_104 = arith.constant 0 : index
    %c0_105 = arith.constant 0 : index
    %229 = vector.load %arg9[%c1_103, %c0_104, %c0_105] : memref<2x1x32xf32, #tpu.memory_space<vmem>>, vector<1x1x32xf32>
    %230 = vector.shape_cast %229 : vector<1x1x32xf32> to vector<1x32xf32>
    %cst_106 = arith.constant dense<0.000000e+00> : vector<16xf32>
    %231 = vector.multi_reduction <add>, %226, %cst_106 [1] : vector<16x32xf32> to vector<16xf32>
    %232 = vector.shape_cast %231 : vector<16xf32> to vector<16x1xf32>
    %cst_107 = arith.constant 3.200000e+01 : f32
    %233 = vector.broadcast %cst_107 : f32 to vector<16x1xf32>
    %234 = arith.divf %232, %233 : vector<16x1xf32>
    %235 = vector.broadcast %234 : vector<16x1xf32> to vector<16x32xf32>
    %236 = arith.subf %226, %235 : vector<16x32xf32>
    %237 = arith.mulf %236, %236 : vector<16x32xf32>
    %cst_108 = arith.constant dense<0.000000e+00> : vector<16xf32>
    %238 = vector.multi_reduction <add>, %237, %cst_108 [1] : vector<16x32xf32> to vector<16xf32>
    %239 = vector.shape_cast %238 : vector<16xf32> to vector<16x1xf32>
    %cst_109 = arith.constant 3.200000e+01 : f32
    %240 = vector.broadcast %cst_109 : f32 to vector<16x1xf32>
    %241 = arith.divf %239, %240 : vector<16x1xf32>
    %cst_110 = arith.constant 9.99999996E-13 : f32
    %242 = vector.broadcast %cst_110 : f32 to vector<16x1xf32>
    %243 = arith.addf %241, %242 : vector<16x1xf32>
    %244 = math.rsqrt %243 : vector<16x1xf32>
    %245 = vector.broadcast %244 : vector<16x1xf32> to vector<16x32xf32>
    %246 = arith.mulf %236, %245 : vector<16x32xf32>
    %247 = vector.broadcast %228 : vector<1x32xf32> to vector<16x32xf32>
    %248 = arith.mulf %246, %247 : vector<16x32xf32>
    %249 = vector.broadcast %230 : vector<1x32xf32> to vector<16x32xf32>
    %250 = arith.addf %248, %249 : vector<16x32xf32>
    %251 = arith.truncf %250 : vector<16x32xf32> to vector<16x32xbf16>
    %c1_111 = arith.constant 1 : index
    %c0_112 = arith.constant 0 : index
    %c0_113 = arith.constant 0 : index
    %252 = vector.load %arg10[%c1_111, %c0_112, %c0_113] : memref<2x32x64xbf16, #tpu.memory_space<vmem>>, vector<1x32x64xbf16>
    %253 = vector.shape_cast %252 : vector<1x32x64xbf16> to vector<32x64xbf16>
    %cst_114 = arith.constant dense<0.000000e+00> : vector<16x64xf32>
    %254 = tpu.matmul %251, %253, %cst_114 {dimension_numbers = #tpu.dot_dimension_numbers<[1], [0], [0], [1], [0, 0, 1, 1], [], []>} : vector<16x32xbf16>, vector<32x64xbf16>, vector<16x64xf32> -> vector<16x64xf32>
    %c1_115 = arith.constant 1 : index
    %c0_116 = arith.constant 0 : index
    %c0_117 = arith.constant 0 : index
    %255 = vector.load %arg11[%c1_115, %c0_116, %c0_117] : memref<2x1x64xf32, #tpu.memory_space<vmem>>, vector<1x1x64xf32>
    %256 = vector.shape_cast %255 : vector<1x1x64xf32> to vector<1x64xf32>
    %257 = vector.broadcast %256 : vector<1x64xf32> to vector<16x64xf32>
    %258 = arith.addf %254, %257 : vector<16x64xf32>
    %cst_118 = arith.constant 5.000000e-01 : f32
    %259 = vector.broadcast %cst_118 : f32 to vector<16x64xf32>
    %260 = arith.mulf %259, %258 : vector<16x64xf32>
    %cst_119 = arith.constant 4.471500e-02 : f32
    %261 = vector.broadcast %cst_119 : f32 to vector<16x64xf32>
    %262 = arith.mulf %261, %258 : vector<16x64xf32>
    %263 = arith.mulf %262, %258 : vector<16x64xf32>
    %264 = arith.mulf %263, %258 : vector<16x64xf32>
    %265 = arith.addf %258, %264 : vector<16x64xf32>
    %cst_120 = arith.constant 0.797884583 : f32
    %266 = vector.broadcast %cst_120 : f32 to vector<16x64xf32>
    %267 = arith.mulf %266, %265 : vector<16x64xf32>
    %268 = math.tanh %267 : vector<16x64xf32>
    %cst_121 = arith.constant 1.000000e+00 : f32
    %269 = vector.broadcast %cst_121 : f32 to vector<16x64xf32>
    %270 = arith.addf %269, %268 : vector<16x64xf32>
    %271 = arith.mulf %260, %270 : vector<16x64xf32>
    %272 = arith.truncf %271 : vector<16x64xf32> to vector<16x64xbf16>
    %c1_122 = arith.constant 1 : index
    %c0_123 = arith.constant 0 : index
    %c0_124 = arith.constant 0 : index
    %273 = vector.load %arg12[%c1_122, %c0_123, %c0_124] : memref<2x64x32xbf16, #tpu.memory_space<vmem>>, vector<1x64x32xbf16>
    %274 = vector.shape_cast %273 : vector<1x64x32xbf16> to vector<64x32xbf16>
    %cst_125 = arith.constant dense<0.000000e+00> : vector<16x32xf32>
    %275 = tpu.matmul %272, %274, %cst_125 {dimension_numbers = #tpu.dot_dimension_numbers<[1], [0], [0], [1], [0, 0, 1, 1], [], []>} : vector<16x64xbf16>, vector<64x32xbf16>, vector<16x32xf32> -> vector<16x32xf32>
    %c1_126 = arith.constant 1 : index
    %c0_127 = arith.constant 0 : index
    %c0_128 = arith.constant 0 : index
    %276 = vector.load %arg13[%c1_126, %c0_127, %c0_128] : memref<2x1x32xf32, #tpu.memory_space<vmem>>, vector<1x1x32xf32>
    %277 = vector.shape_cast %276 : vector<1x1x32xf32> to vector<1x32xf32>
    %278 = vector.broadcast %277 : vector<1x32xf32> to vector<16x32xf32>
    %279 = arith.addf %275, %278 : vector<16x32xf32>
    %280 = arith.addf %279, %250 : vector<16x32xf32>
    %c1_129 = arith.constant 1 : index
    %c0_130 = arith.constant 0 : index
    %c0_131 = arith.constant 0 : index
    %281 = vector.load %arg14[%c1_129, %c0_130, %c0_131] : memref<2x1x32xf32, #tpu.memory_space<vmem>>, vector<1x1x32xf32>
    %282 = vector.shape_cast %281 : vector<1x1x32xf32> to vector<1x32xf32>
    %c1_132 = arith.constant 1 : index
    %c0_133 = arith.constant 0 : index
    %c0_134 = arith.constant 0 : index
    %283 = vector.load %arg15[%c1_132, %c0_133, %c0_134] : memref<2x1x32xf32, #tpu.memory_space<vmem>>, vector<1x1x32xf32>
    %284 = vector.shape_cast %283 : vector<1x1x32xf32> to vector<1x32xf32>
    %cst_135 = arith.constant dense<0.000000e+00> : vector<16xf32>
    %285 = vector.multi_reduction <add>, %280, %cst_135 [1] : vector<16x32xf32> to vector<16xf32>
    %286 = vector.shape_cast %285 : vector<16xf32> to vector<16x1xf32>
    %cst_136 = arith.constant 3.200000e+01 : f32
    %287 = vector.broadcast %cst_136 : f32 to vector<16x1xf32>
    %288 = arith.divf %286, %287 : vector<16x1xf32>
    %289 = vector.broadcast %288 : vector<16x1xf32> to vector<16x32xf32>
    %290 = arith.subf %280, %289 : vector<16x32xf32>
    %291 = arith.mulf %290, %290 : vector<16x32xf32>
    %cst_137 = arith.constant dense<0.000000e+00> : vector<16xf32>
    %292 = vector.multi_reduction <add>, %291, %cst_137 [1] : vector<16x32xf32> to vector<16xf32>
    %293 = vector.shape_cast %292 : vector<16xf32> to vector<16x1xf32>
    %cst_138 = arith.constant 3.200000e+01 : f32
    %294 = vector.broadcast %cst_138 : f32 to vector<16x1xf32>
    %295 = arith.divf %293, %294 : vector<16x1xf32>
    %cst_139 = arith.constant 9.99999996E-13 : f32
    %296 = vector.broadcast %cst_139 : f32 to vector<16x1xf32>
    %297 = arith.addf %295, %296 : vector<16x1xf32>
    %298 = math.rsqrt %297 : vector<16x1xf32>
    %299 = vector.broadcast %298 : vector<16x1xf32> to vector<16x32xf32>
    %300 = arith.mulf %290, %299 : vector<16x32xf32>
    %301 = vector.broadcast %282 : vector<1x32xf32> to vector<16x32xf32>
    %302 = arith.mulf %300, %301 : vector<16x32xf32>
    %303 = vector.broadcast %284 : vector<1x32xf32> to vector<16x32xf32>
    %304 = arith.addf %302, %303 : vector<16x32xf32>
    %305 = vector.extract_strided_slice %304 {offsets = [0, 0], sizes = [1, 32], strides = [1, 1]} : vector<16x32xf32> to vector<1x32xf32>
    %306 = vector.extract_strided_slice %304 {offsets = [8, 0], sizes = [1, 32], strides = [1, 1]} : vector<16x32xf32> to vector<1x32xf32>
    %307 = tpu.concatenate %305, %306 in 0 : vector<1x32xf32>, vector<1x32xf32> -> vector<2x32xf32>
    %308 = arith.truncf %307 : vector<2x32xf32> to vector<2x32xbf16>
    %c0_140 = arith.constant 0 : index
    %c0_141 = arith.constant 0 : index
    %309 = vector.load %arg16[%c0_140, %c0_141] : memref<32x32xbf16, #tpu.memory_space<vmem>>, vector<32x32xbf16>
    %cst_142 = arith.constant dense<0.000000e+00> : vector<2x32xf32>
    %310 = tpu.matmul %308, %309, %cst_142 {dimension_numbers = #tpu.dot_dimension_numbers<[1], [0], [0], [1], [0, 0, 1, 1], [], []>} : vector<2x32xbf16>, vector<32x32xbf16>, vector<2x32xf32> -> vector<2x32xf32>
    %c0_143 = arith.constant 0 : index
    %c0_144 = arith.constant 0 : index
    %311 = vector.load %arg17[%c0_143, %c0_144] : memref<1x32xf32, #tpu.memory_space<vmem>>, vector<1x32xf32>
    %312 = vector.broadcast %311 : vector<1x32xf32> to vector<2x32xf32>
    %313 = arith.addf %310, %312 : vector<2x32xf32>
    %314 = math.tanh %313 : vector<2x32xf32>
    %315 = arith.truncf %314 : vector<2x32xf32> to vector<2x32xbf16>
    %c0_145 = arith.constant 0 : index
    %c0_146 = arith.constant 0 : index
    %316 = vector.load %arg18[%c0_145, %c0_146] : memref<32x128xbf16, #tpu.memory_space<vmem>>, vector<32x128xbf16>
    %cst_147 = arith.constant dense<0.000000e+00> : vector<2x128xf32>
    %317 = tpu.matmul %315, %316, %cst_147 {dimension_numbers = #tpu.dot_dimension_numbers<[1], [0], [0], [1], [0, 0, 1, 1], [], []>} : vector<2x32xbf16>, vector<32x128xbf16>, vector<2x128xf32> -> vector<2x128xf32>
    %c0_148 = arith.constant 0 : index
    %c0_149 = arith.constant 0 : index
    %318 = vector.load %arg19[%c0_148, %c0_149] : memref<1x128xf32, #tpu.memory_space<vmem>>, vector<1x128xf32>
    %319 = vector.broadcast %318 : vector<1x128xf32> to vector<2x128xf32>
    %320 = arith.addf %317, %319 : vector<2x128xf32>
    %cst_150 = arith.constant dense<0xFF800000> : vector<2xf32>
    %321 = vector.multi_reduction <maximumf>, %320, %cst_150 [1] : vector<2x128xf32> to vector<2xf32>
    %322 = vector.shape_cast %321 : vector<2xf32> to vector<2x1xf32>
    %323 = vector.broadcast %322 : vector<2x1xf32> to vector<2x128xf32>
    %324 = arith.subf %320, %323 : vector<2x128xf32>
    %325 = math.exp %324 : vector<2x128xf32>
    %cst_151 = arith.constant dense<0.000000e+00> : vector<2xf32>
    %326 = vector.multi_reduction <add>, %325, %cst_151 [1] : vector<2x128xf32> to vector<2xf32>
    %327 = vector.shape_cast %326 : vector<2xf32> to vector<2x1xf32>
    %328 = tpu.reciprocal %327 {approx = true} : vector<2x1xf32> -> vector<2x1xf32>
    %329 = vector.broadcast %328 : vector<2x1xf32> to vector<2x128xf32>
    %330 = arith.mulf %325, %329 : vector<2x128xf32>
    %c0_152 = arith.constant 0 : index
    %c0_153 = arith.constant 0 : index
    %331 = vector.load %arg20[%c0_152, %c0_153] : memref<2x128xf32, #tpu.memory_space<vmem>>, vector<2x128xf32>
    tpu.vector_store %arg20[%c0_152, %c0_153], %330 {strides = array<i32>} : memref<2x128xf32, #tpu.memory_space<vmem>>, vector<2x128xf32>,
    return
  }
}

</mosaic_0001>

<bundles_post_ra>
// kernel: bert_forward.1
= control target key start
LH: loop header
LB: loop body
LE: loop exit
PB: predicated region body
PF: predicated region fallthrough
CT: control target
= control target key end

     0   :  { %vm72_vm0 = vcmask 261120   ;;  %v2056_v15 = vmov 0.0   ;;  %vm2057_vm1 = vmmov 0   ;;  %s2059_s24 = smov 96   ;;  %vm190_vm2 = vcmask 130048   ;;  %s2498_s0 = inlined_call_operand.vmem [shape: bf16[16,32], index: 0, kind: input, shape index: {}]   ;;  %s2499_s4 = inlined_call_operand.vmem [shape: bf16[2,32,96], index: 4, kind: input, shape index: {}]   ;;  %s2500_s2 = inlined_call_operand.vmem [shape: f32[1,32], index: 2, kind: input, shape index: {}]   ;;  %s2501_s3 = inlined_call_operand.vmem [shape: f32[1,32], index: 3, kind: input, shape index: {}]   ;;  %s2502_s5 = inlined_call_operand.vmem [shape: f32[2,1,96], index: 5, kind: input, shape index: {}]   ;;  %s2503_s1 = inlined_call_operand.vmem [shape: f32[16,16], index: 1, kind: input, shape index: {}]   ;;  %s2504_s6 = inlined_call_operand.vmem [shape: bf16[4,16,32], index: 6, kind: input, shape index: {}]   ;;  %s2505_s7 = inlined_call_operand.vmem [shape: f32[2,1,32], index: 7, kind: input, shape index: {}]   ;;  %s2506_s10 = inlined_call_operand.vmem [shape: bf16[2,32,64], index: 10, kind: input, shape index: {}]   ;;  %s2507_s8 = inlined_call_operand.vmem [shape: f32[2,1,32], index: 8, kind: input, shape index: {}]   ;;  %s2508_s9 = inlined_call_operand.vmem [shape: f32[2,1,32], index: 9, kind: input, shape index: {}]   ;;  %s2509_s12 = inlined_call_operand.vmem [shape: bf16[2,64,32], index: 12, kind: input, shape index: {}]   ;;  %s2510_s11 = inlined_call_operand.vmem [shape: f32[2,1,64], index: 11, kind: input, shape index: {}]   ;;  %s2511_s13 = inlined_call_operand.vmem [shape: f32[2,1,32], index: 13, kind: input, shape index: {}]   ;;  %s2512_s14 = inlined_call_operand.vmem [shape: f32[2,1,32], index: 14, kind: input, shape index: {}]   ;;  %s2513_s15 = inlined_call_operand.vmem [shape: f32[2,1,32], index: 15, kind: input, shape index: {}]   ;;  %s2514_s16 = inlined_call_operand.vmem [shape: bf16[32,32], index: 16, kind: input, shape index: {}]   ;;  %s2515_s18 = inlined_call_operand.vmem [shape: bf16[32,128], index: 18, kind: input, shape index: {}]   ;;  %s2516_s17 = inlined_call_operand.vmem [shape: f32[1,32], index: 17, kind: input, shape index: {}]   ;;  %s2517_s19 = inlined_call_operand.vmem [shape: f32[1,128], index: 19, kind: input, shape index: {}]   ;;  %s2518_s20 = inlined_call_operand.vmem [shape: f32[2,128], index: 20, kind: output, shape index: {}]  }
   0x1   :  { %2521 = sst [smem:[#allocation2_spill]] %s2498_s0  ;;  %1815 = vmatprep.subr.bf16.mxu0 %v2056_v15  ;;  %1819 = vmatprep.mubr.msk.bf16.mxu0 %vm2057_vm1, %v2056_v15  ;;  %v2229_v48 = vld [vmem:[%s2503_s1] sm:$0xff]  ;;  %v2235_v52 = vld [vmem:[%s2503_s1 + $0x8] sm:$0xff]  ;;  %s2061_s1 = smov 64   ;;  %vm717_vm3 = vcmask 523264   ;;  %vm1511_vm4 = vcmask 1040384  }
   0x2   :  { %2522 = sst [smem:[#allocation3_spill]] %s2499_s4  ;;  %1823 = vmatprep.subr.bf16.mxu1 %v2056_v15  ;;  %1825 = vmatprep.mubr.msk.bf16.mxu1 %vm2057_vm1, %v2056_v15  ;;  %vm1648_vm5 = vcmask 1041408  }
   0x3   :  { %2523 = sst [smem:[#allocation4_spill]] %s2500_s2  ;;  %s2060_s2 = smov 112  }
   0x4   :  { %2524 = sst [smem:[#allocation5_spill]] %s2501_s3 }
   0x5   :  { %2525 = sst [smem:[#allocation6_spill]] %s2502_s5 }
   0x6   :  { %s2526_s23 = sld [smem:[#allocation2_spill]] }
   0x7   :  { %s2527_s25 = sld [smem:[#allocation3_spill]] }
   0x8   :  { %s2528_s5 = sld [smem:[#allocation4_spill]] }
   0x9   :  { %s2529_s0 = sld [smem:[#allocation5_spill]] }
   0xa   :  { %s2530_s22 = sld [smem:[#allocation6_spill]] }
   0xc   :  { %v1760_v0 = vld [vmem:[%s2526_s23] sm:$0xff]   ;;  %s2058_s23 = smov 80  }
   0xd   :  { %v1761_v1 = vunpack.c.l.bf16 %v1760_v0  ;;  %v1762_v2 = vunpack.c.h.bf16 %v1760_v0  ;;  %v1966_v16 = vld [vmem:[%s2527_s25 + $0x8] sm:$0xff]   ;;  %v1967_v17 = vld [vmem:[%s2527_s25] sm:$0xff]  }
   0xe   :  { %1816 = vmatpush3.bf16.msra.mxu0 %v1966_v16  ;;  %v1665_v26 = vld [vmem:[%s2528_s5] ss:$0 sm:$0xff]  ;;  %s2062_s5 = smov 48  }
   0xf   :  { %v73_v3 = vsel %vm72_vm0, %v1761_v1, 0.0  ;;  %v76_v4 = vsel %vm72_vm0, %v1762_v2, 0.0  ;;  %1817 = vmatprep.subr.bf16.mxu0 %v2056_v15  ;;  %v1666_v30 = vld [vmem:[%s2529_s0] ss:$0 sm:$0xff] }
  0x10   :  { %74 = vadd.xlane.f32.xlu0 %v73_v3  ;;  %v1667_v36 = vld [vmem:[%s2530_s22] ss:$0 sm:$0xff] }
  0x12   :  { %1818 = vmatpush3.bf16.msra.mxu0 %v1967_v17 }
  0x13   :  { %1829 = vmatprep.subr.bf16.mxu0 %v2056_v15 }
  0x14   :  { %77 = vadd.xlane.f32.xlu0 %v76_v4 }
  0x99   :  { %v75_v5 = vpop.xlane.xlu0 %74 }
  0x9a   :  { %v80_v6 = vmul.f32 0.03125, %v75_v5 }
  0x9c   :  { %v82_v7 = vsub.f32 %v1761_v1, %v80_v6 }
  0x9d   :  { %v78_v8 = vpop.xlane.xlu0 %77 }
  0x9e   :  { %v81_v9 = vmul.f32 0.03125, %v78_v8  ;;  %v84_v10 = vmul.f32 %v82_v7, %v82_v7 }
  0xa0   :  { %v83_v11 = vsub.f32 %v1762_v2, %v81_v9  ;;  %v86_v12 = vsel %vm72_vm0, %v84_v10, 0.0 }
  0xa1   :  { %87 = vadd.xlane.f32.xlu1 %v86_v12 }
  0xa2   :  { %v85_v13 = vmul.f32 %v83_v11, %v83_v11 }
  0xa4   :  { %v89_v14 = vsel %vm72_vm0, %v85_v13, 0.0 }
  0xa5   :  { %90 = vadd.xlane.f32.xlu1 %v89_v14 }
 0x12a   :  { %v88_v18 = vpop.xlane.xlu1 %87 }
 0x12b   :  { %v92_v19 = vmul.f32 0.03125, %v88_v18 }
 0x12d   :  { %v94_v20 = vadd.f32 1e-12, %v92_v19 }
 0x12e   :  { %v91_v21 = vpop.xlane.xlu1 %90 }
 0x12f   :  { %1990 = vrsqrt.f32 %v94_v20  ;;  %v93_v22 = vmul.f32 0.03125, %v91_v21 }
 0x131   :  { %v95_v23 = vadd.f32 1e-12, %v93_v22 }
 0x133   :  { %1992 = vrsqrt.f32 %v95_v23 }
 0x13c   :  { %v1991_v24 = vpop.eup %1990 }
 0x13d   :  { %v98_v25 = vmul.f32 %v1991_v24, %v82_v7 }
 0x13f   :  { %v106_v29 = vmul.f32 %v1665_v26, %v98_v25 }
 0x140   :  { %v1993_v27 = vpop.eup %1992 }
 0x141   :  { %v99_v28 = vmul.f32 %v1993_v27, %v83_v11  ;;  %v2195_v32 = vadd.f32 %v1666_v30, %v106_v29 }
 0x143   :  { %v107_v31 = vmul.f32 %v1665_v26, %v99_v28 }
 0x145   :  { %v2197_v33 = vadd.f32 %v1666_v30, %v107_v31 }
 0x147   :  { %v118_v34 = vpack.c.bf16 %v2197_v33, %v2195_v32 }
 0x149   :  { %1820 = vmatmul.mubr.msk.bf16.vlgmr.msra.gmra.mxu0 %vm72_vm0, %v118_v34 }
 0x14a   :  { %1831 = vmatprep.mubr.msk.bf16.mxu0 %vm2057_vm1, %v2056_v15 }
 0x209   :  { %v179_v35 = vpop.f32.mrf.mxu0 }
 0x20a   :  { %v180_v39 = vadd.f32 %v1667_v36, %v179_v35 }
 0x20b   :  { %v1821_v37 = vpop.f32.mrf.mxu0 }
 0x20d   :  { %v182_v38 = vpop.f32.mrf.mxu0 }
 0x20e   :  { %v183_v40 = vadd.f32 %v1667_v36, %v182_v38 }
 0x20f   :  { %v1822_v41 = vpop.f32.mrf.mxu0 }
 0x210   :  { %v2207_v42 = vpack.c.bf16 %v183_v40, %v180_v39  ;;  %v1968_v41 = vld [vmem:[%s2504_s6] sm:$0xff]  }
 0x212   :  { %313 = vrot.lane.b32.xlu1 %v2207_v42, %s2058_s23  ;;  %188 = vrot.lane.b32.xlu0 %v2207_v42, %s2059_s24 }
 0x216   :  { %311 = vrot.lane.b32.xlu1 %v2207_v42, %s2060_s2 }
 0x284   :  { %v189_v43 = vpop.permute.xlu0 %188  ;;  %v314_v45 = vpop.permute.xlu1 %313 }
 0x285   :  { %v195_v44 = vsel %vm190_vm2, %v189_v43, 0  ;;  %v319_v46 = vsel %vm190_vm2, %v314_v45, 0 }
 0x286   :  { %1824 = vmatpush3.bf16.xpose.msra.mxu1 %v195_v44 }
 0x287   :  { %1835 = vmatprep.subr.bf16.mxu1 %v2056_v15 }
 0x288   :  { %v312_v47 = vpop.permute.xlu1 %311 }
 0x28d   :  { %1826 = vmatmul.mubr.msk.bf16.vlgmr.msra.gmra.mxu1 %vm190_vm2, %v2207_v42 }
 0x28e   :  { %1836 = vmatpush3.bf16.xpose.msra.mxu1 %v319_v46  ;;  %1837 = vmatprep.mubr.msk.bf16.mxu1 %vm2057_vm1, %v2056_v15 }
 0x28f   :  { %1847 = vmatprep.subr.bf16.mxu1 %v2056_v15 }
 0x295   :  { %1838 = vmatmul.mubr.msk.bf16.vlgmr.msra.gmra.mxu1 %vm190_vm2, %v312_v47 }
 0x296   :  { %1849 = vmatprep.mubr.msk.bf16.mxu1 %vm2057_vm1, %v2056_v15 }
 0x34d   :  { %v231_v49 = vpop.f32.mrf.mxu1 }
 0x34e   :  { %v232_v50 = vadd.f32 %v231_v49, %v2229_v48 }
 0x34f   :  { %v1827_v51 = vpop.f32.mrf.mxu1 }
 0x350   :  { %v238_v53 = vsel %vm190_vm2, %v232_v50, -inf }
 0x351   :  { %239 = vmax.xlane.f32.xlu1 %v238_v53  ;;  %v234_v54 = vpop.f32.mrf.mxu1 }
 0x352   :  { %v235_v55 = vadd.f32 %v234_v54, %v2235_v52 }
 0x353   :  { %v1828_v56 = vpop.f32.mrf.mxu1 }
 0x354   :  { %v241_v57 = vsel %vm190_vm2, %v235_v55, -inf }
 0x355   :  { %242 = vmax.xlane.f32.xlu0 %v241_v57  ;;  %v355_v58 = vpop.f32.mrf.mxu1 }
 0x356   :  { %v356_v59 = vadd.f32 %v355_v58, %v2229_v48 }
 0x357   :  { %v1839_v60 = vpop.f32.mrf.mxu1 }
 0x358   :  { %v362_v61 = vsel %vm190_vm2, %v356_v59, -inf  ;;  %v1681_v60 = vld [vmem:[%s2505_s7] ss:$0 sm:$0xff] }
 0x359   :  { %363 = vmax.xlane.f32.xlu0 %v362_v61  ;;  %v358_v62 = vpop.f32.mrf.mxu1 }
 0x35a   :  { %v359_v63 = vadd.f32 %v358_v62, %v2235_v52 }
 0x35b   :  { %v1840_v0 = vpop.f32.mrf.mxu1 }
 0x35c   :  { %v365_v1 = vsel %vm190_vm2, %v359_v63, -inf }
 0x35d   :  { %366 = vmax.xlane.f32.xlu0 %v365_v1 }
 0x3da   :  { %v240_v2 = vpop.xlane.xlu1 %239 }
 0x3db   :  { %v244_v3 = vsub.f32 %v232_v50, %v240_v2 }
 0x3dd   :  { %v246_v4 = vmul.f32 1.442695, %v244_v3 }
 0x3de   :  { %v243_v5 = vpop.xlane.xlu0 %242 }
 0x3df   :  { %1994 = vpow2.f32 %v246_v4  ;;  %v245_v6 = vsub.f32 %v235_v55, %v243_v5 }
 0x3e1   :  { %v248_v7 = vmul.f32 1.442695, %v245_v6 }
 0x3e2   :  { %v364_v8 = vpop.xlane.xlu0 %363 }
 0x3e3   :  { %1996 = vpow2.f32 %v248_v7  ;;  %v368_v9 = vsub.f32 %v356_v59, %v364_v8 }
 0x3e5   :  { %v370_v10 = vmul.f32 1.442695, %v368_v9 }
 0x3e6   :  { %v367_v11 = vpop.xlane.xlu0 %366 }
 0x3e7   :  { %1998 = vpow2.f32 %v370_v10  ;;  %v369_v12 = vsub.f32 %v359_v63, %v367_v11 }
 0x3e9   :  { %v372_v13 = vmul.f32 1.442695, %v369_v12 }
 0x3eb   :  { %2000 = vpow2.f32 %v372_v13 }
 0x3ec   :  { %v1995_v14 = vpop.eup %1994 }
 0x3ed   :  { %v250_v16 = vsel %vm190_vm2, %v1995_v14, 0.0 }
 0x3ee   :  { %251 = vadd.xlane.f32.xlu1 %v250_v16 }
 0x3f0   :  { %v1997_v17 = vpop.eup %1996 }
 0x3f1   :  { %v253_v18 = vsel %vm190_vm2, %v1997_v17, 0.0 }
 0x3f2   :  { %254 = vadd.xlane.f32.xlu0 %v253_v18  ;;  %v1971_v18 = vld [vmem:[%s2506_s10] sm:$0xff]  }
 0x3f4   :  { %v1999_v19 = vpop.eup %1998 }
 0x3f5   :  { %v374_v20 = vsel %vm190_vm2, %v1999_v19, 0.0 }
 0x3f6   :  { %375 = vadd.xlane.f32.xlu1 %v374_v20 }
 0x3f8   :  { %v2001_v21 = vpop.eup %2000 }
 0x3f9   :  { %v377_v22 = vsel %vm190_vm2, %v2001_v21, 0.0 }
 0x3fa   :  { %378 = vadd.xlane.f32.xlu0 %v377_v22 }
 0x407   :  { %261 = vrot.lane.b32.xlu1 %v2207_v42, %s2061_s1 }
 0x410   :  { %385 = vrot.lane.b32.xlu0 %v2207_v42, %s2062_s5  ;;  %v1969_v42 = vld [vmem:[%s2504_s6 + $0x8] sm:$0xff]  }
 0x411   :  { %1848 = vmatpush3.bf16.msra.mxu1 %v1969_v42  ;;  %v1684_v42 = vld [vmem:[%s2510_s11] ss:$0 sm:$0xff] }
 0x412   :  { %1859 = vmatprep.subr.bf16.mxu1 %v2056_v15 }
 0x477   :  { %v252_v23 = vpop.xlane.xlu1 %251 }
 0x478   :  { %2002 = vrcp.f32 %v252_v23 }
 0x47b   :  { %v255_v24 = vpop.xlane.xlu0 %254 }
 0x47c   :  { %2004 = vrcp.f32 %v255_v24 }
 0x47f   :  { %v376_v25 = vpop.xlane.xlu1 %375 }
 0x480   :  { %2006 = vrcp.f32 %v376_v25 }
 0x483   :  { %v262_v26 = vpop.permute.xlu1 %261  ;;  %v379_v27 = vpop.xlane.xlu0 %378 }
 0x484   :  { %2008 = vrcp.f32 %v379_v27  ;;  %1830 = vmatpush3.bf16.msra.mxu0 %v262_v26  ;;  %v1682_v27 = vld [vmem:[%s2507_s8] ss:$0 sm:$0xff] }
 0x485   :  { %1841 = vmatprep.subr.bf16.mxu0 %v2056_v15  ;;  %v2003_v28 = vpop.eup %2002 }
 0x486   :  { %v258_v30 = vmul.f32 %v2003_v28, %v1995_v14 }
 0x487   :  { %v386_v35 = vpop.permute.xlu0 %385 }
 0x489   :  { %v2005_v29 = vpop.eup %2004 }
 0x48a   :  { %v259_v31 = vmul.f32 %v2005_v29, %v1997_v17 }
 0x48c   :  { %v260_v34 = vpack.c.bf16 %v259_v31, %v258_v30  ;;  %v1683_v31 = vld [vmem:[%s2508_s9] ss:$0 sm:$0xff] }
 0x48d   :  { %v2007_v36 = vpop.eup %2006 }
 0x48e   :  { %1832 = vmatmul.mubr.msk.bf16.vlgmr.msra.gmra.mxu0 %vm190_vm2, %v260_v34  ;;  %v382_v38 = vmul.f32 %v2007_v36, %v1999_v19 }
 0x48f   :  { %1842 = vmatpush3.bf16.msra.mxu0 %v386_v35  ;;  %1843 = vmatprep.mubr.msk.bf16.mxu0 %vm2057_vm1, %v2056_v15 }
 0x490   :  { %1853 = vmatprep.subr.bf16.mxu0 %v2056_v15 }
 0x491   :  { %v2009_v37 = vpop.eup %2008 }
 0x492   :  { %v383_v39 = vmul.f32 %v2009_v37, %v2001_v21 }
 0x494   :  { %v384_v40 = vpack.c.bf16 %v383_v39, %v382_v38  ;;  %v1972_v38 = vld [vmem:[%s2509_s12 + $0x18] sm:$0xff]   ;;  %v1973_v39 = vld [vmem:[%s2509_s12 + $0x10] sm:$0xff]  }
 0x496   :  { %1844 = vmatmul.mubr.msk.bf16.vlgmr.msra.gmra.mxu0 %vm190_vm2, %v384_v40  ;;  %v1974_v40 = vld [vmem:[%s2509_s12 + $0x8] sm:$0xff]  }
 0x497   :  { %1855 = vmatprep.mubr.msk.bf16.mxu0 %vm2057_vm1, %v2056_v15  ;;  %1854 = vmatpush3.bf16.msra.mxu0 %v1968_v41  ;;  %v1975_v41 = vld [vmem:[%s2509_s12] sm:$0xff]  }
 0x498   :  { %1867 = vmatprep.subr.bf16.mxu0 %v2056_v15 }
 0x54e   :  { %v301_v43 = vpop.f32.mrf.mxu0 }
 0x550   :  { %v1833_v44 = vpop.f32.mrf.mxu0 }
 0x552   :  { %v304_v45 = vpop.f32.mrf.mxu0 }
 0x553   :  { %v308_v46 = vpack.c.bf16 %v304_v45, %v301_v43 }
 0x554   :  { %v1834_v47 = vpop.f32.mrf.mxu0 }
 0x555   :  { %1856 = vmatmul.mubr.msk.bf16.vlgmr.msra.gmra.mxu0 %vm190_vm2, %v308_v46 }
 0x556   :  { %v425_v49 = vpop.f32.mrf.mxu0  ;;  %1875 = vmatprep.mubr.msk.bf16.mxu0 %vm2057_vm1, %v2056_v15  ;;  %1868 = vmatpush3.bf16.msra.mxu0 %v1972_v38  ;;  %v1694_v38 = vld [vmem:[%s2512_s14] ss:$0 sm:$0xff] }
 0x557   :  { %1869 = vmatprep.subr.bf16.mxu0 %v2056_v15 }
 0x558   :  { %v1845_v50 = vpop.f32.mrf.mxu0 }
 0x55a   :  { %v428_v51 = vpop.f32.mrf.mxu0  ;;  %1870 = vmatpush3.bf16.msra.mxu0 %v1973_v39 }
 0x55b   :  { %v432_v53 = vpack.c.bf16 %v428_v51, %v425_v49  ;;  %1871 = vmatprep.subr.bf16.mxu0 %v2056_v15 }
 0x55c   :  { %v1846_v54 = vpop.f32.mrf.mxu0 }
 0x55d   :  { %1850 = vmatmul.mubr.msk.bf16.vlgmr.msra.gmra.mxu1 %vm190_vm2, %v432_v53 }
 0x55e   :  { %1863 = vmatprep.mubr.msk.bf16.mxu1 %vm2057_vm1, %v2056_v15  ;;  %1872 = vmatpush3.bf16.msra.mxu0 %v1974_v40 }
 0x55f   :  { %1873 = vmatprep.subr.bf16.mxu0 %v2056_v15 }
 0x562   :  { %1874 = vmatpush3.bf16.msra.mxu0 %v1975_v41 }
 0x563   :  { %1893 = vmatprep.subr.bf16.mxu0 %v2056_v15 }
 0x615   :  { %v529_v55 = vpop.f32.mrf.mxu0 }
 0x617   :  { %v1857_v56 = vpop.f32.mrf.mxu0 }
 0x619   :  { %v532_v57 = vpop.f32.mrf.mxu0 }
 0x61b   :  { %v1858_v58 = vpop.f32.mrf.mxu0 }
 0x61d   :  { %v479_v59 = vpop.f32.mrf.mxu1 }
 0x61e   :  { %v530_v61 = vadd.f32 %v529_v55, %v479_v59 }
 0x61f   :  { %v1851_v62 = vpop.f32.mrf.mxu1 }
 0x620   :  { %v543_v63 = vadd.f32 %v1681_v60, %v530_v61 }
 0x621   :  { %v482_v0 = vpop.f32.mrf.mxu1 }
 0x622   :  { %v533_v1 = vadd.f32 %v532_v57, %v482_v0  ;;  %v545_v2 = vadd.f32 %v543_v63, %v2195_v32 }
 0x623   :  { %v1852_v3 = vpop.f32.mrf.mxu1 }
 0x624   :  { %v544_v4 = vadd.f32 %v1681_v60, %v533_v1  ;;  %v549_v5 = vsel %vm72_vm0, %v545_v2, 0.0 }
 0x625   :  { %550 = vadd.xlane.f32.xlu1 %v549_v5 }
 0x626   :  { %v546_v6 = vadd.f32 %v544_v4, %v2197_v33  ;;  %v1970_v33 = vld [vmem:[%s2506_s10 + $0x8] sm:$0xff]  }
 0x627   :  { %1860 = vmatpush3.bf16.msra.mxu1 %v1970_v33 }
 0x628   :  { %v552_v7 = vsel %vm72_vm0, %v546_v6, 0.0  ;;  %1861 = vmatprep.subr.bf16.mxu1 %v2056_v15 }
 0x629   :  { %553 = vadd.xlane.f32.xlu0 %v552_v7 }
 0x62b   :  { %1862 = vmatpush3.bf16.msra.mxu1 %v1971_v18 }
 0x62c   :  { %1879 = vmatprep.subr.bf16.mxu1 %v2056_v15 }
 0x6ae   :  { %v551_v8 = vpop.xlane.xlu1 %550 }
 0x6af   :  { %v555_v9 = vmul.f32 0.03125, %v551_v8 }
 0x6b1   :  { %v557_v10 = vsub.f32 %v545_v2, %v555_v9 }
 0x6b2   :  { %v554_v11 = vpop.xlane.xlu0 %553 }
 0x6b3   :  { %v556_v12 = vmul.f32 0.03125, %v554_v11  ;;  %v559_v13 = vmul.f32 %v557_v10, %v557_v10 }
 0x6b5   :  { %v558_v14 = vsub.f32 %v546_v6, %v556_v12  ;;  %v561_v16 = vsel %vm72_vm0, %v559_v13, 0.0  ;;  %v1688_v6 = vld [vmem:[%s2511_s13] ss:$0 sm:$0xff] }
 0x6b6   :  { %562 = vadd.xlane.f32.xlu1 %v561_v16 }
 0x6b7   :  { %v560_v32 = vmul.f32 %v558_v14, %v558_v14 }
 0x6b9   :  { %v564_v17 = vsel %vm72_vm0, %v560_v32, 0.0 }
 0x6ba   :  { %565 = vadd.xlane.f32.xlu0 %v564_v17 }
 0x73f   :  { %v563_v19 = vpop.xlane.xlu1 %562 }
 0x740   :  { %v567_v20 = vmul.f32 0.03125, %v563_v19 }
 0x742   :  { %v569_v21 = vadd.f32 1e-12, %v567_v20 }
 0x743   :  { %v566_v22 = vpop.xlane.xlu0 %565 }
 0x744   :  { %2010 = vrsqrt.f32 %v569_v21  ;;  %v568_v23 = vmul.f32 0.03125, %v566_v22 }
 0x746   :  { %v570_v24 = vadd.f32 1e-12, %v568_v23 }
 0x748   :  { %2012 = vrsqrt.f32 %v570_v24 }
 0x751   :  { %v2011_v25 = vpop.eup %2010 }
 0x752   :  { %v573_v26 = vmul.f32 %v2011_v25, %v557_v10 }
 0x754   :  { %v581_v30 = vmul.f32 %v1682_v27, %v573_v26  ;;  %v1976_v26 = vld [vmem:[%s2527_s25 + $0x18] sm:$0xff]  }
 0x755   :  { %v2013_v28 = vpop.eup %2012 }
 0x756   :  { %v574_v29 = vmul.f32 %v2013_v28, %v558_v14  ;;  %v589_v35 = vadd.f32 %v1683_v31, %v581_v30 }
 0x758   :  { %v582_v34 = vmul.f32 %v1682_v27, %v574_v29  ;;  %v1977_v27 = vld [vmem:[%s2527_s25 + $0x10] sm:$0xff]  }
 0x75a   :  { %v590_v36 = vadd.f32 %v1683_v31, %v582_v34 }
 0x75c   :  { %v591_v37 = vpack.c.bf16 %v590_v36, %v589_v35 }
 0x75e   :  { %1864 = vmatmul.mubr.msk.bf16.vlgmr.msra.gmra.mxu1 %vm72_vm0, %v591_v37 }
 0x75f   :  { %1883 = vmatprep.mubr.msk.bf16.mxu1 %vm2057_vm1, %v2056_v15  ;;  %1880 = vmatpush3.bf16.msra.mxu1 %v1976_v26 }
 0x760   :  { %1881 = vmatprep.subr.bf16.mxu1 %v2056_v15 }
 0x763   :  { %1882 = vmatpush3.bf16.msra.mxu1 %v1977_v27 }
 0x764   :  { %1887 = vmatprep.subr.bf16.mxu1 %v2056_v15 }
 0x81e   :  { %v652_v43 = vpop.f32.mrf.mxu1 }
 0x81f   :  { %v653_v44 = vadd.f32 %v1684_v42, %v652_v43 }
 0x820   :  { %v1865_v45 = vpop.f32.mrf.mxu1 }
 0x821   :  { %v661_v46 = vmul.f32 0.044715, %v653_v44  ;;  %v659_v0 = vmul.f32 0.5, %v653_v44 }
 0x822   :  { %v655_v47 = vpop.f32.mrf.mxu1 }
 0x823   :  { %v663_v49 = vmul.f32 %v661_v46, %v653_v44  ;;  %v656_v50 = vadd.f32 %v1684_v42, %v655_v47  ;;  %v1695_v42 = vld [vmem:[%s2513_s15] ss:$0 sm:$0xff] }
 0x824   :  { %v1866_v51 = vpop.f32.mrf.mxu1 }
 0x825   :  { %v665_v53 = vmul.f32 %v663_v49, %v653_v44  ;;  %v662_v54 = vmul.f32 0.044715, %v656_v50  ;;  %v660_v1 = vmul.f32 0.5, %v656_v50  ;;  %v1701_v49 = vld [vmem:[%s2530_s22 + $0x1] ss:$0 sm:$0xff] }
 0x827   :  { %v667_v55 = vadd.f32 %v665_v53, %v653_v44  ;;  %v664_v56 = vmul.f32 %v662_v54, %v656_v50 }
 0x829   :  { %v669_v57 = vmul.f32 0.7978846, %v667_v55  ;;  %v666_v58 = vmul.f32 %v664_v56, %v656_v50 }
 0x82b   :  { %2014 = vtanh.f32 %v669_v57  ;;  %v668_v59 = vadd.f32 %v666_v58, %v656_v50 }
 0x82d   :  { %v670_v60 = vmul.f32 0.7978846, %v668_v59 }
 0x82f   :  { %2016 = vtanh.f32 %v670_v60 }
 0x838   :  { %v2015_v61 = vpop.eup %2014 }
 0x839   :  { %v673_v62 = vadd.f32 1.0, %v2015_v61 }
 0x83b   :  { %v675_v3 = vmul.f32 %v673_v62, %v659_v0 }
 0x83c   :  { %v2017_v63 = vpop.eup %2016 }
 0x83d   :  { %v674_v2 = vadd.f32 1.0, %v2017_v63 }
 0x83f   :  { %v676_v4 = vmul.f32 %v674_v2, %v660_v1 }
 0x841   :  { %v677_v5 = vpack.c.bf16 %v676_v4, %v675_v3 }
 0x843   :  { %1876 = vmatmul.mubr.msk.bf16.vlgmr.msra.gmra.mxu0 %vm717_vm3, %v677_v5 }
 0x844   :  { %1895 = vmatprep.mubr.msk.bf16.mxu0 %vm2057_vm1, %v2056_v15 }
 0x903   :  { %v755_v7 = vpop.f32.mrf.mxu0 }
 0x904   :  { %v756_v8 = vadd.f32 %v1688_v6, %v755_v7 }
 0x905   :  { %v1877_v9 = vpop.f32.mrf.mxu0 }
 0x906   :  { %v762_v10 = vadd.f32 %v756_v8, %v589_v35 }
 0x907   :  { %v758_v11 = vpop.f32.mrf.mxu0 }
 0x908   :  { %v759_v12 = vadd.f32 %v1688_v6, %v758_v11  ;;  %v766_v13 = vsel %vm72_vm0, %v762_v10, 0.0 }
 0x909   :  { %767 = vadd.xlane.f32.xlu1 %v766_v13  ;;  %v1878_v14 = vpop.f32.mrf.mxu0 }
 0x90a   :  { %v763_v16 = vadd.f32 %v759_v12, %v590_v36 }
 0x90c   :  { %v769_v32 = vsel %vm72_vm0, %v763_v16, 0.0 }
 0x90d   :  { %770 = vadd.xlane.f32.xlu0 %v769_v32 }
 0x992   :  { %v768_v17 = vpop.xlane.xlu1 %767 }
 0x993   :  { %v772_v33 = vmul.f32 0.03125, %v768_v17 }
 0x995   :  { %v774_v18 = vsub.f32 %v762_v10, %v772_v33 }
 0x996   :  { %v771_v19 = vpop.xlane.xlu0 %770 }
 0x997   :  { %v773_v20 = vmul.f32 0.03125, %v771_v19  ;;  %v776_v21 = vmul.f32 %v774_v18, %v774_v18 }
 0x999   :  { %v775_v22 = vsub.f32 %v763_v16, %v773_v20  ;;  %v778_v23 = vsel %vm72_vm0, %v776_v21, 0.0 }
 0x99a   :  { %779 = vadd.xlane.f32.xlu1 %v778_v23 }
 0x99b   :  { %v777_v24 = vmul.f32 %v775_v22, %v775_v22 }
 0x99d   :  { %v781_v25 = vsel %vm72_vm0, %v777_v24, 0.0 }
 0x99e   :  { %782 = vadd.xlane.f32.xlu0 %v781_v25 }
 0xa23   :  { %v780_v28 = vpop.xlane.xlu1 %779 }
 0xa24   :  { %v784_v29 = vmul.f32 0.03125, %v780_v28 }
 0xa26   :  { %v786_v30 = vadd.f32 1e-12, %v784_v29 }
 0xa27   :  { %v783_v31 = vpop.xlane.xlu0 %782 }
 0xa28   :  { %2018 = vrsqrt.f32 %v786_v30  ;;  %v785_v34 = vmul.f32 0.03125, %v783_v31 }
 0xa2a   :  { %v787_v35 = vadd.f32 1e-12, %v785_v34 }
 0xa2c   :  { %2020 = vrsqrt.f32 %v787_v35 }
 0xa35   :  { %v2019_v36 = vpop.eup %2018 }
 0xa36   :  { %v790_v37 = vmul.f32 %v2019_v36, %v774_v18 }
 0xa38   :  { %v798_v41 = vmul.f32 %v1694_v38, %v790_v37 }
 0xa39   :  { %v2021_v39 = vpop.eup %2020 }
 0xa3a   :  { %v791_v40 = vmul.f32 %v2021_v39, %v775_v22  ;;  %v2343_v44 = vadd.f32 %v1695_v42, %v798_v41 }
 0xa3c   :  { %v799_v43 = vmul.f32 %v1694_v38, %v791_v40 }
 0xa3e   :  { %v2345_v45 = vadd.f32 %v1695_v42, %v799_v43 }
 0xa40   :  { %v808_v46 = vpack.c.bf16 %v2345_v45, %v2343_v44 }
 0xa42   :  { %1884 = vmatmul.mubr.msk.bf16.vlgmr.msra.gmra.mxu1 %vm72_vm0, %v808_v46 }
 0xa43   :  { %1889 = vmatprep.mubr.msk.bf16.mxu1 %vm2057_vm1, %v2056_v15 }
 0xb02   :  { %v871_v47 = vpop.f32.mrf.mxu1 }
 0xb03   :  { %v872_v53 = vadd.f32 %v1701_v49, %v871_v47 }
 0xb04   :  { %v1885_v50 = vpop.f32.mrf.mxu1 }
 0xb06   :  { %v874_v51 = vpop.f32.mrf.mxu1 }
 0xb07   :  { %v875_v54 = vadd.f32 %v1701_v49, %v874_v51 }
 0xb08   :  { %v1886_v55 = vpop.f32.mrf.mxu1 }
 0xb09   :  { %v2355_v56 = vpack.c.bf16 %v875_v54, %v872_v53  ;;  %v1978_v53 = vld [vmem:[%s2504_s6 + $0x10] sm:$0xff]   ;;  %v1979_v54 = vld [vmem:[%s2504_s6 + $0x18] sm:$0xff]  }
 0xb0b   :  { %1005 = vrot.lane.b32.xlu0 %v2355_v56, %s2058_s23  ;;  %880 = vrot.lane.b32.xlu1 %v2355_v56, %s2059_s24 }
 0xb0f   :  { %1003 = vrot.lane.b32.xlu1 %v2355_v56, %s2060_s2 }
 0xb7d   :  { %v881_v57 = vpop.permute.xlu1 %880  ;;  %v1006_v59 = vpop.permute.xlu0 %1005 }
 0xb7e   :  { %v886_v58 = vsel %vm190_vm2, %v881_v57, 0  ;;  %v1011_v60 = vsel %vm190_vm2, %v1006_v59, 0 }
 0xb7f   :  { %1888 = vmatpush3.bf16.xpose.msra.mxu1 %v886_v58 }
 0xb80   :  { %1899 = vmatprep.subr.bf16.mxu1 %v2056_v15 }
 0xb81   :  { %v1004_v61 = vpop.permute.xlu1 %1003 }
 0xb86   :  { %1890 = vmatmul.mubr.msk.bf16.vlgmr.msra.gmra.mxu1 %vm190_vm2, %v2355_v56 }
 0xb87   :  { %1900 = vmatpush3.bf16.xpose.msra.mxu1 %v1011_v60  ;;  %1901 = vmatprep.mubr.msk.bf16.mxu1 %vm2057_vm1, %v2056_v15 }
 0xb88   :  { %1911 = vmatprep.subr.bf16.mxu1 %v2056_v15 }
 0xb8e   :  { %1902 = vmatmul.mubr.msk.bf16.vlgmr.msra.gmra.mxu1 %vm190_vm2, %v1004_v61 }
 0xb8f   :  { %1913 = vmatprep.mubr.msk.bf16.mxu1 %vm2057_vm1, %v2056_v15  ;;  %1912 = vmatpush3.bf16.msra.mxu1 %v1979_v54 }
 0xb90   :  { %1923 = vmatprep.subr.bf16.mxu1 %v2056_v15 }
 0xc46   :  { %v922_v62 = vpop.f32.mrf.mxu1 }
 0xc47   :  { %v923_v63 = vadd.f32 %v922_v62, %v2229_v48 }
 0xc48   :  { %v1891_v0 = vpop.f32.mrf.mxu1 }
 0xc49   :  { %v929_v1 = vsel %vm190_vm2, %v923_v63, -inf }
 0xc4a   :  { %930 = vmax.xlane.f32.xlu1 %v929_v1  ;;  %v925_v2 = vpop.f32.mrf.mxu1 }
 0xc4b   :  { %v926_v3 = vadd.f32 %v925_v2, %v2235_v52 }
 0xc4c   :  { %v1892_v4 = vpop.f32.mrf.mxu1 }
 0xc4d   :  { %v932_v5 = vsel %vm190_vm2, %v926_v3, -inf }
 0xc4e   :  { %933 = vmax.xlane.f32.xlu0 %v932_v5  ;;  %v1047_v6 = vpop.f32.mrf.mxu1 }
 0xc4f   :  { %v1048_v7 = vadd.f32 %v1047_v6, %v2229_v48  ;;  %v1718_v6 = vld [vmem:[%s2505_s7 + $0x1] ss:$0 sm:$0xff] }
 0xc50   :  { %v1903_v8 = vpop.f32.mrf.mxu1 }
 0xc51   :  { %v1054_v9 = vsel %vm190_vm2, %v1048_v7, -inf }
 0xc52   :  { %1055 = vmax.xlane.f32.xlu0 %v1054_v9  ;;  %v1050_v10 = vpop.f32.mrf.mxu1 }
 0xc53   :  { %v1051_v11 = vadd.f32 %v1050_v10, %v2235_v52 }
 0xc54   :  { %v1904_v12 = vpop.f32.mrf.mxu1 }
 0xc55   :  { %v1057_v13 = vsel %vm190_vm2, %v1051_v11, -inf }
 0xc56   :  { %1058 = vmax.xlane.f32.xlu1 %v1057_v13 }
 0xcd3   :  { %v931_v14 = vpop.xlane.xlu1 %930 }
 0xcd4   :  { %v935_v16 = vsub.f32 %v923_v63, %v931_v14 }
 0xcd6   :  { %v937_v32 = vmul.f32 1.442695, %v935_v16 }
 0xcd7   :  { %v934_v17 = vpop.xlane.xlu0 %933 }
 0xcd8   :  { %2022 = vpow2.f32 %v937_v32  ;;  %v936_v33 = vsub.f32 %v926_v3, %v934_v17 }
 0xcda   :  { %v939_v18 = vmul.f32 1.442695, %v936_v33 }
 0xcdb   :  { %v1056_v19 = vpop.xlane.xlu0 %1055 }
 0xcdc   :  { %2024 = vpow2.f32 %v939_v18  ;;  %v1060_v48 = vsub.f32 %v1048_v7, %v1056_v19 }
 0xcde   :  { %v1062_v20 = vmul.f32 1.442695, %v1060_v48 }
 0xcdf   :  { %v1059_v21 = vpop.xlane.xlu1 %1058 }
 0xce0   :  { %2026 = vpow2.f32 %v1062_v20  ;;  %v1061_v22 = vsub.f32 %v1051_v11, %v1059_v21 }
 0xce2   :  { %v1064_v23 = vmul.f32 1.442695, %v1061_v22 }
 0xce4   :  { %2028 = vpow2.f32 %v1064_v23 }
 0xce5   :  { %v2023_v52 = vpop.eup %2022 }
 0xce6   :  { %v941_v24 = vsel %vm190_vm2, %v2023_v52, 0.0 }
 0xce7   :  { %942 = vadd.xlane.f32.xlu0 %v941_v24  ;;  %v1981_v24 = vld [vmem:[%s2506_s10 + $0x10] sm:$0xff]  }
 0xce9   :  { %v2025_v25 = vpop.eup %2024 }
 0xcea   :  { %v944_v26 = vsel %vm190_vm2, %v2025_v25, 0.0 }
 0xceb   :  { %945 = vadd.xlane.f32.xlu1 %v944_v26 }
 0xced   :  { %v2027_v27 = vpop.eup %2026 }
 0xcee   :  { %v1066_v28 = vsel %vm190_vm2, %v2027_v27, 0.0 }
 0xcef   :  { %1067 = vadd.xlane.f32.xlu0 %v1066_v28 }
 0xcf1   :  { %v2029_v29 = vpop.eup %2028 }
 0xcf2   :  { %v1069_v30 = vsel %vm190_vm2, %v2029_v29, 0.0 }
 0xcf3   :  { %1070 = vadd.xlane.f32.xlu1 %v1069_v30 }
 0xd04   :  { %1077 = vrot.lane.b32.xlu1 %v2355_v56, %s2062_s5 }
 0xd05   :  { %952 = vrot.lane.b32.xlu0 %v2355_v56, %s2061_s1 }
 0xd70   :  { %v943_v31 = vpop.xlane.xlu0 %942 }
 0xd71   :  { %2030 = vrcp.f32 %v943_v31 }
 0xd74   :  { %v946_v34 = vpop.xlane.xlu1 %945 }
 0xd75   :  { %2032 = vrcp.f32 %v946_v34 }
 0xd78   :  { %v1068_v35 = vpop.xlane.xlu0 %1067 }
 0xd79   :  { %2034 = vrcp.f32 %v1068_v35  ;;  %v1721_v35 = vld [vmem:[%s2507_s8 + $0x1] ss:$0 sm:$0xff] }
 0xd7c   :  { %v953_v36 = vpop.permute.xlu0 %952  ;;  %v1071_v37 = vpop.xlane.xlu1 %1070 }
 0xd7d   :  { %2036 = vrcp.f32 %v1071_v37  ;;  %1894 = vmatpush3.bf16.msra.mxu0 %v953_v36 }
 0xd7e   :  { %1905 = vmatprep.subr.bf16.mxu0 %v2056_v15  ;;  %v2031_v38 = vpop.eup %2030 }
 0xd7f   :  { %v949_v40 = vmul.f32 %v2031_v38, %v2023_v52 }
 0xd80   :  { %v1078_v43 = vpop.permute.xlu1 %1077 }
 0xd82   :  { %v2033_v39 = vpop.eup %2032 }
 0xd83   :  { %v950_v41 = vmul.f32 %v2033_v39, %v2025_v25  ;;  %v1722_v39 = vld [vmem:[%s2508_s9 + $0x1] ss:$0 sm:$0xff] }
 0xd85   :  { %v951_v42 = vpack.c.bf16 %v950_v41, %v949_v40 }
 0xd86   :  { %v2035_v46 = vpop.eup %2034 }
 0xd87   :  { %1896 = vmatmul.mubr.msk.bf16.vlgmr.msra.gmra.mxu0 %vm190_vm2, %v951_v42  ;;  %v1074_v49 = vmul.f32 %v2035_v46, %v2027_v27  ;;  %v1982_v46 = vld [vmem:[%s2509_s12 + $0x38] sm:$0xff]  }
 0xd88   :  { %1906 = vmatpush3.bf16.msra.mxu0 %v1078_v43  ;;  %1907 = vmatprep.mubr.msk.bf16.mxu0 %vm2057_vm1, %v2056_v15 }
 0xd89   :  { %1917 = vmatprep.subr.bf16.mxu0 %v2056_v15 }
 0xd8a   :  { %v2037_v47 = vpop.eup %2036 }
 0xd8b   :  { %v1075_v50 = vmul.f32 %v2037_v47, %v2029_v29  ;;  %v1983_v47 = vld [vmem:[%s2509_s12 + $0x30] sm:$0xff]  }
 0xd8d   :  { %v1076_v51 = vpack.c.bf16 %v1075_v50, %v1074_v49  ;;  %v1984_v49 = vld [vmem:[%s2509_s12 + $0x28] sm:$0xff]   ;;  %v1985_v50 = vld [vmem:[%s2509_s12 + $0x20] sm:$0xff]  }
 0xd8f   :  { %1908 = vmatmul.mubr.msk.bf16.vlgmr.msra.gmra.mxu0 %vm190_vm2, %v1076_v51  ;;  %v1728_v51 = vld [vmem:[%s2510_s11 + $0x1] ss:$0 sm:$0xff] }
 0xd90   :  { %1919 = vmatprep.mubr.msk.bf16.mxu0 %vm2057_vm1, %v2056_v15  ;;  %1918 = vmatpush3.bf16.msra.mxu0 %v1978_v53 }
 0xd91   :  { %1931 = vmatprep.subr.bf16.mxu0 %v2056_v15 }
 0xe47   :  { %v992_v55 = vpop.f32.mrf.mxu0 }
 0xe49   :  { %v1897_v56 = vpop.f32.mrf.mxu0 }
 0xe4b   :  { %v995_v57 = vpop.f32.mrf.mxu0 }
 0xe4c   :  { %v999_v58 = vpack.c.bf16 %v995_v57, %v992_v55 }
 0xe4d   :  { %v1898_v59 = vpop.f32.mrf.mxu0 }
 0xe4e   :  { %1920 = vmatmul.mubr.msk.bf16.vlgmr.msra.gmra.mxu0 %vm190_vm2, %v999_v58 }
 0xe4f   :  { %v1117_v60 = vpop.f32.mrf.mxu0  ;;  %1939 = vmatprep.mubr.msk.bf16.mxu0 %vm2057_vm1, %v2056_v15  ;;  %1932 = vmatpush3.bf16.msra.mxu0 %v1982_v46 }
 0xe50   :  { %1933 = vmatprep.subr.bf16.mxu0 %v2056_v15 }
 0xe51   :  { %v1909_v61 = vpop.f32.mrf.mxu0 }
 0xe53   :  { %v1120_v62 = vpop.f32.mrf.mxu0  ;;  %1934 = vmatpush3.bf16.msra.mxu0 %v1983_v47 }
 0xe54   :  { %v1124_v63 = vpack.c.bf16 %v1120_v62, %v1117_v60  ;;  %1935 = vmatprep.subr.bf16.mxu0 %v2056_v15 }
 0xe55   :  { %v1910_v0 = vpop.f32.mrf.mxu0 }
 0xe56   :  { %1914 = vmatmul.mubr.msk.bf16.vlgmr.msra.gmra.mxu1 %vm190_vm2, %v1124_v63 }
 0xe57   :  { %1927 = vmatprep.mubr.msk.bf16.mxu1 %vm2057_vm1, %v2056_v15  ;;  %1936 = vmatpush3.bf16.msra.mxu0 %v1984_v49 }
 0xe58   :  { %1937 = vmatprep.subr.bf16.mxu0 %v2056_v15 }
 0xe5b   :  { %1938 = vmatpush3.bf16.msra.mxu0 %v1985_v50  ;;  %v1750_v50 = vld [vmem:[%s2513_s15 + $0x1] ss:$0 sm:$0xff] }
 0xf0e   :  { %v1221_v1 = vpop.f32.mrf.mxu0 }
 0xf10   :  { %v1921_v2 = vpop.f32.mrf.mxu0 }
 0xf12   :  { %v1224_v3 = vpop.f32.mrf.mxu0 }
 0xf14   :  { %v1922_v4 = vpop.f32.mrf.mxu0 }
 0xf16   :  { %v1171_v5 = vpop.f32.mrf.mxu1 }
 0xf17   :  { %v1222_v7 = vadd.f32 %v1221_v1, %v1171_v5 }
 0xf18   :  { %v1915_v8 = vpop.f32.mrf.mxu1 }
 0xf19   :  { %v1236_v9 = vadd.f32 %v1718_v6, %v1222_v7 }
 0xf1a   :  { %v1174_v10 = vpop.f32.mrf.mxu1 }
 0xf1b   :  { %v1225_v11 = vadd.f32 %v1224_v3, %v1174_v10  ;;  %v1238_v12 = vadd.f32 %v1236_v9, %v2343_v44 }
 0xf1c   :  { %v1916_v13 = vpop.f32.mrf.mxu1 }
 0xf1d   :  { %v1237_v14 = vadd.f32 %v1718_v6, %v1225_v11  ;;  %v1244_v16 = vsel %vm72_vm0, %v1238_v12, 0.0 }
 0xf1e   :  { %1245 = vadd.xlane.f32.xlu1 %v1244_v16 }
 0xf1f   :  { %v1239_v32 = vadd.f32 %v1237_v14, %v2345_v45  ;;  %v1980_v45 = vld [vmem:[%s2506_s10 + $0x18] sm:$0xff]   ;;  %v1741_v14 = vld [vmem:[%s2511_s13 + $0x1] ss:$0 sm:$0xff] }
 0xf20   :  { %1924 = vmatpush3.bf16.msra.mxu1 %v1980_v45 }
 0xf21   :  { %v1247_v17 = vsel %vm72_vm0, %v1239_v32, 0.0  ;;  %1925 = vmatprep.subr.bf16.mxu1 %v2056_v15 }
 0xf22   :  { %1248 = vadd.xlane.f32.xlu0 %v1247_v17 }
 0xf24   :  { %1926 = vmatpush3.bf16.msra.mxu1 %v1981_v24 }
 0xf25   :  { %1943 = vmatprep.subr.bf16.mxu1 %v2056_v15 }
 0xfa7   :  { %v1246_v33 = vpop.xlane.xlu1 %1245 }
 0xfa8   :  { %v1250_v18 = vmul.f32 0.03125, %v1246_v33 }
 0xfaa   :  { %v1252_v19 = vsub.f32 %v1238_v12, %v1250_v18 }
 0xfab   :  { %v1249_v48 = vpop.xlane.xlu0 %1248 }
 0xfac   :  { %v1251_v20 = vmul.f32 0.03125, %v1249_v48  ;;  %v1254_v21 = vmul.f32 %v1252_v19, %v1252_v19 }
 0xfae   :  { %v1253_v22 = vsub.f32 %v1239_v32, %v1251_v20  ;;  %v1256_v23 = vsel %vm72_vm0, %v1254_v21, 0.0 }
 0xfaf   :  { %1257 = vadd.xlane.f32.xlu0 %v1256_v23 }
 0xfb0   :  { %v1255_v44 = vmul.f32 %v1253_v22, %v1253_v22 }
 0xfb2   :  { %v1259_v52 = vsel %vm72_vm0, %v1255_v44, 0.0 }
 0xfb3   :  { %1260 = vadd.xlane.f32.xlu1 %v1259_v52 }
0x1038   :  { %v1258_v25 = vpop.xlane.xlu0 %1257 }
0x1039   :  { %v1262_v26 = vmul.f32 0.03125, %v1258_v25 }
0x103b   :  { %v1264_v27 = vadd.f32 1e-12, %v1262_v26 }
0x103c   :  { %v1261_v28 = vpop.xlane.xlu1 %1260 }
0x103d   :  { %2038 = vrsqrt.f32 %v1264_v27  ;;  %v1263_v29 = vmul.f32 0.03125, %v1261_v28 }
0x103f   :  { %v1265_v30 = vadd.f32 1e-12, %v1263_v29 }
0x1041   :  { %2040 = vrsqrt.f32 %v1265_v30  ;;  %v1986_v30 = vld [vmem:[%s2514_s16 + $0x8] sm:$0xff]  }
0x104a   :  { %v2039_v31 = vpop.eup %2038 }
0x104b   :  { %v1268_v34 = vmul.f32 %v2039_v31, %v1252_v19  ;;  %v1987_v31 = vld [vmem:[%s2514_s16] sm:$0xff]  }
0x104d   :  { %v1276_v38 = vmul.f32 %v1721_v35, %v1268_v34 }
0x104e   :  { %v2041_v36 = vpop.eup %2040 }
0x104f   :  { %v1269_v37 = vmul.f32 %v2041_v36, %v1253_v22  ;;  %v1284_v41 = vadd.f32 %v1722_v39, %v1276_v38 }
0x1051   :  { %v1277_v40 = vmul.f32 %v1721_v35, %v1269_v37 }
0x1053   :  { %v1285_v42 = vadd.f32 %v1722_v39, %v1277_v40 }
0x1055   :  { %v1286_v43 = vpack.c.bf16 %v1285_v42, %v1284_v41 }
0x1057   :  { %1928 = vmatmul.mubr.msk.bf16.vlgmr.msra.gmra.mxu1 %vm72_vm0, %v1286_v43  ;;  %v1749_v43 = vld [vmem:[%s2512_s14 + $0x1] ss:$0 sm:$0xff] }
0x1058   :  { %1947 = vmatprep.mubr.msk.bf16.mxu1 %vm2057_vm1, %v2056_v15  ;;  %1944 = vmatpush3.bf16.msra.mxu1 %v1986_v30 }
0x1059   :  { %1945 = vmatprep.subr.bf16.mxu1 %v2056_v15 }
0x105c   :  { %1946 = vmatpush3.bf16.msra.mxu1 %v1987_v31 }
0x105d   :  { %1951 = vmatprep.subr.bf16.mxu1 %v2056_v15 }
0x1117   :  { %v1349_v53 = vpop.f32.mrf.mxu1 }
0x1118   :  { %v1350_v54 = vadd.f32 %v1728_v51, %v1349_v53 }
0x1119   :  { %v1929_v55 = vpop.f32.mrf.mxu1 }
0x111a   :  { %v1358_v56 = vmul.f32 0.044715, %v1350_v54  ;;  %v1356_v8 = vmul.f32 0.5, %v1350_v54 }
0x111b   :  { %v1352_v57 = vpop.f32.mrf.mxu1 }
0x111c   :  { %v1360_v58 = vmul.f32 %v1358_v56, %v1350_v54  ;;  %v1353_v59 = vadd.f32 %v1728_v51, %v1352_v57  ;;  %v1988_v57 = vld [vmem:[%s2515_s18 + $0x8] sm:$0xff]  }
0x111d   :  { %v1930_v60 = vpop.f32.mrf.mxu1 }
0x111e   :  { %v1362_v61 = vmul.f32 %v1360_v58, %v1350_v54  ;;  %v1359_v62 = vmul.f32 0.044715, %v1353_v59  ;;  %v1357_v9 = vmul.f32 0.5, %v1353_v59  ;;  %v1989_v58 = vld [vmem:[%s2515_s18] sm:$0xff]  }
0x1120   :  { %v1364_v63 = vadd.f32 %v1362_v61, %v1350_v54  ;;  %v1361_v0 = vmul.f32 %v1359_v62, %v1353_v59 }
0x1122   :  { %v1366_v1 = vmul.f32 0.7978846, %v1364_v63  ;;  %v1363_v2 = vmul.f32 %v1361_v0, %v1353_v59 }
0x1124   :  { %2042 = vtanh.f32 %v1366_v1  ;;  %v1365_v3 = vadd.f32 %v1363_v2, %v1353_v59  ;;  %v1751_v59 = vld [vmem:[%s2516_s17] ss:$0 sm:$0xff] }
0x1126   :  { %v1367_v4 = vmul.f32 0.7978846, %v1365_v3 }
0x1128   :  { %2044 = vtanh.f32 %v1367_v4 }
0x1131   :  { %v2043_v5 = vpop.eup %2042 }
0x1132   :  { %v1370_v6 = vadd.f32 1.0, %v2043_v5 }
0x1134   :  { %v1372_v11 = vmul.f32 %v1370_v6, %v1356_v8 }
0x1135   :  { %v2045_v7 = vpop.eup %2044 }
0x1136   :  { %v1371_v10 = vadd.f32 1.0, %v2045_v7 }
0x1138   :  { %v1373_v12 = vmul.f32 %v1371_v10, %v1357_v9 }
0x113a   :  { %v1374_v13 = vpack.c.bf16 %v1373_v12, %v1372_v11 }
0x113c   :  { %1940 = vmatmul.mubr.msk.bf16.vlgmr.msra.gmra.mxu0 %vm717_vm3, %v1374_v13 }
0x11fc   :  { %v1453_v16 = vpop.f32.mrf.mxu0 }
0x11fd   :  { %v1454_v32 = vadd.f32 %v1741_v14, %v1453_v16 }
0x11fe   :  { %v1941_v17 = vpop.f32.mrf.mxu0 }
0x11ff   :  { %v1460_v33 = vadd.f32 %v1454_v32, %v1284_v41 }
0x1200   :  { %v1456_v18 = vpop.f32.mrf.mxu0 }
0x1201   :  { %v1457_v19 = vadd.f32 %v1741_v14, %v1456_v18  ;;  %v1466_v48 = vsel %vm72_vm0, %v1460_v33, 0.0 }
0x1202   :  { %1467 = vadd.xlane.f32.xlu1 %v1466_v48  ;;  %v1942_v20 = vpop.f32.mrf.mxu0 }
0x1203   :  { %v1461_v21 = vadd.f32 %v1457_v19, %v1285_v42 }
0x1205   :  { %v1469_v22 = vsel %vm72_vm0, %v1461_v21, 0.0 }
0x1206   :  { %1470 = vadd.xlane.f32.xlu0 %v1469_v22 }
0x128b   :  { %v1468_v23 = vpop.xlane.xlu1 %1467 }
0x128c   :  { %v1472_v44 = vmul.f32 0.03125, %v1468_v23 }
0x128e   :  { %v1474_v52 = vsub.f32 %v1460_v33, %v1472_v44 }
0x128f   :  { %v1471_v45 = vpop.xlane.xlu0 %1470 }
0x1290   :  { %v1473_v24 = vmul.f32 0.03125, %v1471_v45  ;;  %v1476_v25 = vmul.f32 %v1474_v52, %v1474_v52 }
0x1292   :  { %v1475_v26 = vsub.f32 %v1461_v21, %v1473_v24  ;;  %v1478_v27 = vsel %vm72_vm0, %v1476_v25, 0.0 }
0x1293   :  { %1479 = vadd.xlane.f32.xlu1 %v1478_v27 }
0x1294   :  { %v1477_v28 = vmul.f32 %v1475_v26, %v1475_v26 }
0x1296   :  { %v1481_v29 = vsel %vm72_vm0, %v1477_v28, 0.0 }
0x1297   :  { %1482 = vadd.xlane.f32.xlu0 %v1481_v29 }
0x131c   :  { %v1480_v34 = vpop.xlane.xlu1 %1479 }
0x131d   :  { %v1484_v35 = vmul.f32 0.03125, %v1480_v34 }
0x131f   :  { %v1486_v36 = vadd.f32 1e-12, %v1484_v35 }
0x1320   :  { %v1483_v37 = vpop.xlane.xlu0 %1482 }
0x1321   :  { %2046 = vrsqrt.f32 %v1486_v36  ;;  %v1485_v38 = vmul.f32 0.03125, %v1483_v37 }
0x1323   :  { %v1487_v39 = vadd.f32 1e-12, %v1485_v38 }
0x1325   :  { %2048 = vrsqrt.f32 %v1487_v39 }
0x132e   :  { %v2047_v40 = vpop.eup %2046 }
0x132f   :  { %v1490_v41 = vmul.f32 %v2047_v40, %v1474_v52 }
0x1331   :  { %v1498_v47 = vmul.f32 %v1749_v43, %v1490_v41 }
0x1332   :  { %v2049_v42 = vpop.eup %2048 }
0x1333   :  { %v1491_v46 = vmul.f32 %v2049_v42, %v1475_v26  ;;  %v1506_v53 = vadd.f32 %v1750_v50, %v1498_v47 }
0x1335   :  { %v1499_v49 = vmul.f32 %v1749_v43, %v1491_v46 }
0x1337   :  { %v1507_v51 = vadd.f32 %v1750_v50, %v1499_v49 }
0x1339   :  { %v1509_v54 = vrot.slane %v1507_v51, 7 }
0x133b   :  { %v1512_v55 = vsel %vm1511_vm4, %v1506_v53, %v1509_v54 }
0x133c   :  { %v1513_v56 = vpack.c.bf16 %v1512_v55, %v1512_v55 }
0x133e   :  { %1948 = vmatmul.mubr.msk.bf16.vlgmr.msra.gmra.mxu1 %vm72_vm0, %v1513_v56 }
0x133f   :  { %1955 = vmatprep.mubr.msk.bf16.mxu1 %vm2057_vm1, %v2056_v15  ;;  %1952 = vmatpush3.bf16.msra.mxu1 %v1988_v57 }
0x1340   :  { %1953 = vmatprep.subr.bf16.mxu1 %v2056_v15  ;;  %v1755_v15 = vld [vmem:[%s2517_s19] ss:$0 sm:$0xff] }
0x1343   :  { %1954 = vmatpush3.bf16.msra.mxu1 %v1989_v58 }
0x13fe   :  { %v1574_v60 = vpop.f32.mrf.mxu1 }
0x13ff   :  { %v1575_v61 = vadd.f32 %v1751_v59, %v1574_v60 }
0x1400   :  { %v1949_v62 = vpop.f32.mrf.mxu1 }
0x1401   :  { %2050 = vtanh.f32 %v1575_v61 }
0x1402   :  { %v1577_v63 = vpop.f32.mrf.mxu1 }
0x1404   :  { %v1950_v0 = vpop.f32.mrf.mxu1 }
0x140e   :  { %v2051_v1 = vpop.eup %2050 }
0x140f   :  { %v1581_v2 = vpack.c.bf16 %v2051_v1, %v2051_v1 }
0x1411   :  { %1956 = vmatmul.mubr.msk.bf16.vlgmr.msra.gmra.mxu1 %vm72_vm0, %v1581_v2 }
0x14d1   :  { %v1642_v3 = vpop.f32.mrf.mxu1 }
0x14d2   :  { %v1643_v4 = vadd.f32 %v1755_v15, %v1642_v3 }
0x14d3   :  { %v1957_v5 = vpop.f32.mrf.mxu1 }
0x14d4   :  { %v1649_v6 = vsel %vm1648_vm5, %v1643_v4, -inf }
0x14d5   :  { %1650 = vmax.xlane.f32.xlu0 %v1649_v6  ;;  %v1645_v7 = vpop.f32.mrf.mxu1 }
0x14d7   :  { %v1958_v8 = vpop.f32.mrf.mxu1 }
0x155e   :  { %v1651_v9 = vpop.xlane.xlu0 %1650 }
0x155f   :  { %v1652_v10 = vsub.f32 %v1643_v4, %v1651_v9 }
0x1561   :  { %v1653_v11 = vmul.f32 1.442695, %v1652_v10 }
0x1563   :  { %2052 = vpow2.f32 %v1653_v11 }
0x1570   :  { %v2053_v12 = vpop.eup %2052 }
0x1571   :  { %v1655_v13 = vsel %vm1648_vm5, %v2053_v12, 0.0 }
0x1572   :  { %1656 = vadd.xlane.f32.xlu1 %v1655_v13 }
0x15fb   :  { %v1657_v14 = vpop.xlane.xlu1 %1656 }
0x15fc   :  { %2054 = vrcp.f32 %v1657_v14 }
0x1609   :  { %v2055_v16 = vpop.eup %2054 }
0x160a   :  { %v1659_v32 = vmul.f32 %v2055_v16, %v2053_v12 }
0x160c   :  { %1660 = vst [vmem:[%s2518_s20] sm:$0x3] %v1659_v32 }

</bundles_post_ra>
